<compile_context>
chip_gen: v7x
topology: tpu7x:2x2x1
jax: 0.10.0
libtpu: 0.0.40
codegen_flags: <defaults>
</compile_context>

<pallas_src>
import math
import jax
import jax.numpy as jnp
from jax.experimental import pallas as pl
from jax.experimental.pallas import tpu as pltpu

D_IN = 784
D_HID = 400
D_HID_PAD = 512              # clean MXU / vreg tiling for the hidden dim
D_LAT = 30
D_LAT_PAD = 128              # lane-dense latent
D_HEADS = 2 * D_LAT_PAD      # fused [mu | logvar] head width (256)


def vae_forward_kernel(x_ref, eps_ref,
                       we_ref, be_ref,
                       wh_ref, bh_ref,
                       wd_ref, bd_ref,
                       wout_ref, bout_ref,
                       pred_ref, heads_ref):
    # ---- encode: h = relu(x @ We + be)   (x is bf16, acc f32) ----
    h = jnp.dot(x_ref[...], we_ref[...],
                preferred_element_type=jnp.float32) + be_ref[...]
    h = jnp.maximum(h, 0.0)

    # ---- fused heads: [mu | logvar] = h @ Wh + bh (single MXU pass) ----
    heads = jnp.dot(h.astype(jnp.bfloat16), wh_ref[...],
                    preferred_element_type=jnp.float32) + bh_ref[...]
    heads_ref[...] = heads                       # one lane-dense 256-wide store

    mu = heads[:, :D_LAT_PAD]                    # padded lanes are exactly 0
    logvar = heads[:, D_LAT_PAD:]                # padded lanes are exactly 0

    # ---- sample: z = mu + exp(logvar / 2) * eps ----
    # eps pad lanes may hold arbitrary (finite) values; wd's padded rows are 0
    # so they never reach the decoder output.
    z = mu + jnp.exp(logvar * 0.5) * eps_ref[...]

    # ---- decode: pred = sigmoid(relu(z @ Wd + bd) @ Wout + bout) ----
    d = jnp.dot(z.astype(jnp.bfloat16), wd_ref[...],
                preferred_element_type=jnp.float32) + bd_ref[...]
    d = jnp.maximum(d, 0.0)
    logits = jnp.dot(d.astype(jnp.bfloat16), wout_ref[...],
                     preferred_element_type=jnp.float32) + bout_ref[...]
    # exact sigmoid via tanh: one EUP op/element instead of exp + reciprocal
    pred = 0.5 * jnp.tanh(0.5 * logits) + 0.5
    pred_ref[...] = pred.astype(pred_ref.dtype)  # bf16 store (halved stream)


def prepare_params(p):
    """Fuse mu/std heads, zero-pad hidden 400->512 and latent 30->128, bf16 weights."""
    we = (jnp.zeros((D_IN, D_HID_PAD), jnp.float32)
          .at[:, :D_HID].set(p["we"])).astype(jnp.bfloat16)
    be = jnp.zeros((1, D_HID_PAD), jnp.float32).at[:, :D_HID].set(p["be"])

    wh = jnp.zeros((D_HID_PAD, D_HEADS), jnp.float32)
    wh = (wh.at[:D_HID, :D_LAT].set(p["wmu"])
            .at[:D_HID, D_LAT_PAD:D_LAT_PAD + D_LAT].set(p["wstd"])
          ).astype(jnp.bfloat16)
    bh = (jnp.zeros((1, D_HEADS), jnp.float32)
          .at[:, :D_LAT].set(p["bmu"])
          .at[:, D_LAT_PAD:D_LAT_PAD + D_LAT].set(p["bstd"]))

    wd = (jnp.zeros((D_LAT_PAD, D_HID_PAD), jnp.float32)
          .at[:D_LAT, :D_HID].set(p["wd"])).astype(jnp.bfloat16)
    bd = jnp.zeros((1, D_HID_PAD), jnp.float32).at[:, :D_HID].set(p["bd"])

    wout = (jnp.zeros((D_HID_PAD, D_IN), jnp.float32)
            .at[:D_HID, :].set(p["wout"])).astype(jnp.bfloat16)

    return dict(we=we, be=be, wh=wh, bh=bh, wd=wd, bd=bd,
                wout=wout, bout=p["bout"])


def _pick_batch_tile(B):
    """Big tiles amortize ~0.35 us/step overhead; keep >=2 steps once B >= 256
    so v7x can shard the 'parallel' batch axis over both TensorCores."""
    if B >= 1024:
        return 512
    if B >= 512:
        return 256
    if B >= 256:
        return 128
    return max(8, ((B + 7) // 8) * 8)   # small batch: one sublane-aligned tile


def vae_forward(x, eps, params):
    """x: [B, 784] f32/bf16.  eps: [B, 128] (lanes >= 30 are ignored)."""
    B = x.shape[0]
    kp = prepare_params(params)

    TB = _pick_batch_tile(B)
    Bp = ((B + TB - 1) // TB) * TB

    x_b = x.astype(jnp.bfloat16)
    eps_b = eps.astype(jnp.bfloat16)
    if Bp != B:
        x_b = jnp.pad(x_b, ((0, Bp - B), (0, 0)))
        eps_b = jnp.pad(eps_b, ((0, Bp - B), (0, 0)))

    grid = (Bp // TB,)
    batched = lambda i: (i, 0)    # x / eps / outputs advance with batch index
    resident = lambda i: (0, 0)   # weights & biases stay in VMEM across steps

    in_specs = [
        pl.BlockSpec((TB, D_IN), batched),              # x (bf16)
        pl.BlockSpec((TB, D_LAT_PAD), batched),         # eps (bf16)
        pl.BlockSpec((D_IN, D_HID_PAD), resident),      # we
        pl.BlockSpec((1, D_HID_PAD), resident),         # be
        pl.BlockSpec((D_HID_PAD, D_HEADS), resident),   # wh (fused mu|logvar)
        pl.BlockSpec((1, D_HEADS), resident),           # bh
        pl.BlockSpec((D_LAT_PAD, D_HID_PAD), resident), # wd (padded rows = 0)
        pl.BlockSpec((1, D_HID_PAD), resident),         # bd
        pl.BlockSpec((D_HID_PAD, D_IN), resident),      # wout
        pl.BlockSpec((1, D_IN), resident),              # bout
    ]
    out_specs = (
        pl.BlockSpec((TB, D_IN), batched),              # pred (bf16)
        pl.BlockSpec((TB, D_HEADS), batched),           # heads = [mu | logvar]
    )
    out_shape = (
        jax.ShapeDtypeStruct((Bp, D_IN), jnp.bfloat16),
        jax.ShapeDtypeStruct((Bp, D_HEADS), jnp.float32),
    )

    pred, heads = pl.pallas_call(
        vae_forward_kernel,
        out_shape=out_shape,
        grid=grid,
        in_specs=in_specs,
        out_specs=out_specs,
        compiler_params=pltpu.CompilerParams(
            dimension_semantics=("parallel",)),
    )(x_b, eps_b,
      kp["we"], kp["be"], kp["wh"], kp["bh"],
      kp["wd"], kp["bd"], kp["wout"], kp["bout"])

    pred = pred[:B]
    mu = heads[:B, :D_LAT]
    logvar = heads[:B, D_LAT_PAD:D_LAT_PAD + D_LAT]
    return pred, mu, logvar


def init_params(key):
    """Deterministic init mimicking PyTorch nn.Linear default U(-1/sqrt(in), 1/sqrt(in))."""
    def linear(key, d_in, d_out):
        kw, kb = jax.random.split(key)
        bound = 1.0 / math.sqrt(d_in)
        w = jax.random.uniform(kw, (d_in, d_out), jnp.float32, -bound, bound)
        b = jax.random.uniform(kb, (1, d_out), jnp.float32, -bound, bound)
        return w, b

    k1, k2, k3, k4, k5 = jax.random.split(key, 5)
    we, be = linear(k1, D_IN, D_HID)
    wmu, bmu = linear(k2, D_HID, D_LAT)
    wstd, bstd = linear(k3, D_HID, D_LAT)
    wd, bd = linear(k4, D_LAT, D_HID)
    wout, bout = linear(k5, D_HID, D_IN)
    return dict(we=we, be=be, wmu=wmu, bmu=bmu, wstd=wstd, bstd=bstd,
                wd=wd, bd=bd, wout=wout, bout=bout)


def vae_forward_ref(x, eps, p):
    """Pure-JAX f32 reference (matches the PyTorch module's forward)."""
    h = jnp.maximum(x @ p["we"] + p["be"], 0.0)
    mu = h @ p["wmu"] + p["bmu"]
    logvar = h @ p["wstd"] + p["bstd"]
    z = mu + jnp.exp(logvar * 0.5) * eps
    d = jnp.maximum(z @ p["wd"] + p["bd"], 0.0)
    pred = jax.nn.sigmoid(d @ p["wout"] + p["bout"])
    return pred, mu, logvar


if __name__ == "__main__":
    key = jax.random.PRNGKey(0)
    k_param, k_x, k_eps = jax.random.split(key, 3)

    params = init_params(k_param)

    B = 8  # small demo batch; kernel tiles 128-512 rows for large batches
    # x plays the role of flattened MNIST images: [B, 784] in [0, 1).
    x = jax.random.uniform(k_x, (B, D_IN), jnp.float32)
    # eps replaces torch.FloatTensor(...).normal_() — generated directly at the
    # lane-dense width 128; only the first 30 lanes are semantically used.
    eps = jax.random.normal(k_eps, (B, D_LAT_PAD), jnp.float32)

    pred, mu, logvar = vae_forward(x, eps, params)
    jax.block_until_ready((pred, mu, logvar))

    # sanity check against a pure-JAX f32 reference (tolerance relaxed for
    # bf16 weights / inputs and the bf16 pred output)
    pred_r, mu_r, logvar_r = vae_forward_ref(x, eps[:, :D_LAT], params)
    assert float(jnp.max(jnp.abs(pred.astype(jnp.float32) - pred_r))) <= 3e-2, "pred mismatch"
    assert float(jnp.max(jnp.abs(mu - mu_r))) <= 3e-2, "mu mismatch"
    assert float(jnp.max(jnp.abs(logvar - logvar_r))) <= 3e-2, "logvar mismatch"

    print("KERNEL_OK")
</pallas_src>

<mosaic_0001>
module attributes {stable_mosaic.version = 11 : i64} {
  func.func @vae_forward_kernel(%arg0: i32, %arg1: memref<8x784xbf16, #tpu.memory_space<vmem>>, %arg2: memref<8x128xbf16, #tpu.memory_space<vmem>>, %arg3: memref<784x512xbf16, #tpu.memory_space<vmem>>, %arg4: memref<1x512xf32, #tpu.memory_space<vmem>>, %arg5: memref<512x256xbf16, #tpu.memory_space<vmem>>, %arg6: memref<1x256xf32, #tpu.memory_space<vmem>>, %arg7: memref<128x512xbf16, #tpu.memory_space<vmem>>, %arg8: memref<1x512xf32, #tpu.memory_space<vmem>>, %arg9: memref<512x784xbf16, #tpu.memory_space<vmem>>, %arg10: memref<1x784xf32, #tpu.memory_space<vmem>>, %arg11: memref<8x784xbf16, #tpu.memory_space<vmem>>, %arg12: memref<8x256xf32, #tpu.memory_space<vmem>>) attributes {dimension_semantics = [#tpu.dimension_semantics<parallel>], iteration_bounds = array<i64: 1>, scalar_prefetch = 0 : i64, scratch_operands = 0 : i64, tpu.core_type = #tpu.core_type<tc>, window_params = [{transform_indices = @transform_0, window_bounds = array<i64: 8, 784>}, {transform_indices = @transform_1, window_bounds = array<i64: 8, 128>}, {pipeline_mode = #tpu.pipeline_mode<synchronous>, transform_indices = @transform_2, window_bounds = array<i64: 784, 512>}, {pipeline_mode = #tpu.pipeline_mode<synchronous>, transform_indices = @transform_3, window_bounds = array<i64: 1, 512>}, {pipeline_mode = #tpu.pipeline_mode<synchronous>, transform_indices = @transform_4, window_bounds = array<i64: 512, 256>}, {pipeline_mode = #tpu.pipeline_mode<synchronous>, transform_indices = @transform_5, window_bounds = array<i64: 1, 256>}, {pipeline_mode = #tpu.pipeline_mode<synchronous>, transform_indices = @transform_6, window_bounds = array<i64: 128, 512>}, {pipeline_mode = #tpu.pipeline_mode<synchronous>, transform_indices = @transform_7, window_bounds = array<i64: 1, 512>}, {pipeline_mode = #tpu.pipeline_mode<synchronous>, transform_indices = @transform_8, window_bounds = array<i64: 512, 784>}, {pipeline_mode = #tpu.pipeline_mode<synchronous>, transform_indices = @transform_9, window_bounds = array<i64: 1, 784>}, {transform_indices = @transform_10, window_bounds = array<i64: 8, 784>}, {transform_indices = @transform_11, window_bounds = array<i64: 8, 256>}]} {
    %c0 = arith.constant 0 : index
    %c0_0 = arith.constant 0 : index
    %0 = vector.load %arg1[%c0, %c0_0] : memref<8x784xbf16, #tpu.memory_space<vmem>>, vector<8x784xbf16>
    %c0_1 = arith.constant 0 : index
    %c0_2 = arith.constant 0 : index
    %1 = vector.load %arg3[%c0_1, %c0_2] : memref<784x512xbf16, #tpu.memory_space<vmem>>, vector<784x512xbf16>
    %cst = arith.constant dense<0.000000e+00> : vector<8x512xf32>
    %2 = tpu.matmul %0, %1, %cst {dimension_numbers = #tpu.dot_dimension_numbers<[1], [0], [0], [1], [0, 0, 1, 1], [], []>} : vector<8x784xbf16>, vector<784x512xbf16>, vector<8x512xf32> -> vector<8x512xf32>
    %c0_3 = arith.constant 0 : index
    %c0_4 = arith.constant 0 : index
    %3 = vector.load %arg4[%c0_3, %c0_4] : memref<1x512xf32, #tpu.memory_space<vmem>>, vector<1x512xf32>
    %4 = vector.broadcast %3 : vector<1x512xf32> to vector<8x512xf32>
    %5 = arith.addf %2, %4 : vector<8x512xf32>
    %cst_5 = arith.constant 0.000000e+00 : f32
    %6 = vector.broadcast %cst_5 : f32 to vector<8x512xf32>
    %7 = arith.maximumf %5, %6 : vector<8x512xf32>
    %8 = arith.truncf %7 : vector<8x512xf32> to vector<8x512xbf16>
    %c0_6 = arith.constant 0 : index
    %c0_7 = arith.constant 0 : index
    %9 = vector.load %arg5[%c0_6, %c0_7] : memref<512x256xbf16, #tpu.memory_space<vmem>>, vector<512x256xbf16>
    %cst_8 = arith.constant dense<0.000000e+00> : vector<8x256xf32>
    %10 = tpu.matmul %8, %9, %cst_8 {dimension_numbers = #tpu.dot_dimension_numbers<[1], [0], [0], [1], [0, 0, 1, 1], [], []>} : vector<8x512xbf16>, vector<512x256xbf16>, vector<8x256xf32> -> vector<8x256xf32>
    %c0_9 = arith.constant 0 : index
    %c0_10 = arith.constant 0 : index
    %11 = vector.load %arg6[%c0_9, %c0_10] : memref<1x256xf32, #tpu.memory_space<vmem>>, vector<1x256xf32>
    %12 = vector.broadcast %11 : vector<1x256xf32> to vector<8x256xf32>
    %13 = arith.addf %10, %12 : vector<8x256xf32>
    %c0_11 = arith.constant 0 : index
    %c0_12 = arith.constant 0 : index
    %14 = vector.load %arg12[%c0_11, %c0_12] : memref<8x256xf32, #tpu.memory_space<vmem>>, vector<8x256xf32>
    tpu.vector_store %arg12[%c0_11, %c0_12], %13 {strides = array<i32>} : memref<8x256xf32, #tpu.memory_space<vmem>>, vector<8x256xf32>,
    %15 = vector.extract_strided_slice %13 {offsets = [0, 0], sizes = [8, 128], strides = [1, 1]} : vector<8x256xf32> to vector<8x128xf32>
    %16 = vector.extract_strided_slice %13 {offsets = [0, 128], sizes = [8, 128], strides = [1, 1]} : vector<8x256xf32> to vector<8x128xf32>
    %cst_13 = arith.constant 5.000000e-01 : f32
    %17 = vector.broadcast %cst_13 : f32 to vector<8x128xf32>
    %18 = arith.mulf %16, %17 : vector<8x128xf32>
    %19 = math.exp %18 : vector<8x128xf32>
    %c0_14 = arith.constant 0 : index
    %c0_15 = arith.constant 0 : index
    %20 = vector.load %arg2[%c0_14, %c0_15] : memref<8x128xbf16, #tpu.memory_space<vmem>>, vector<8x128xbf16>
    %21 = arith.extf %20 : vector<8x128xbf16> to vector<8x128xf32>
    %22 = arith.mulf %19, %21 : vector<8x128xf32>
    %23 = arith.addf %15, %22 : vector<8x128xf32>
    %24 = arith.truncf %23 : vector<8x128xf32> to vector<8x128xbf16>
    %c0_16 = arith.constant 0 : index
    %c0_17 = arith.constant 0 : index
    %25 = vector.load %arg7[%c0_16, %c0_17] : memref<128x512xbf16, #tpu.memory_space<vmem>>, vector<128x512xbf16>
    %cst_18 = arith.constant dense<0.000000e+00> : vector<8x512xf32>
    %26 = tpu.matmul %24, %25, %cst_18 {dimension_numbers = #tpu.dot_dimension_numbers<[1], [0], [0], [1], [0, 0, 1, 1], [], []>} : vector<8x128xbf16>, vector<128x512xbf16>, vector<8x512xf32> -> vector<8x512xf32>
    %c0_19 = arith.constant 0 : index
    %c0_20 = arith.constant 0 : index
    %27 = vector.load %arg8[%c0_19, %c0_20] : memref<1x512xf32, #tpu.memory_space<vmem>>, vector<1x512xf32>
    %28 = vector.broadcast %27 : vector<1x512xf32> to vector<8x512xf32>
    %29 = arith.addf %26, %28 : vector<8x512xf32>
    %cst_21 = arith.constant 0.000000e+00 : f32
    %30 = vector.broadcast %cst_21 : f32 to vector<8x512xf32>
    %31 = arith.maximumf %29, %30 : vector<8x512xf32>
    %32 = arith.truncf %31 : vector<8x512xf32> to vector<8x512xbf16>
    %c0_22 = arith.constant 0 : index
    %c0_23 = arith.constant 0 : index
    %33 = vector.load %arg9[%c0_22, %c0_23] : memref<512x784xbf16, #tpu.memory_space<vmem>>, vector<512x784xbf16>
    %cst_24 = arith.constant dense<0.000000e+00> : vector<8x784xf32>
    %34 = tpu.matmul %32, %33, %cst_24 {dimension_numbers = #tpu.dot_dimension_numbers<[1], [0], [0], [1], [0, 0, 1, 1], [], []>} : vector<8x512xbf16>, vector<512x784xbf16>, vector<8x784xf32> -> vector<8x784xf32>
    %c0_25 = arith.constant 0 : index
    %c0_26 = arith.constant 0 : index
    %35 = vector.load %arg10[%c0_25, %c0_26] : memref<1x784xf32, #tpu.memory_space<vmem>>, vector<1x784xf32>
    %36 = vector.broadcast %35 : vector<1x784xf32> to vector<8x784xf32>
    %37 = arith.addf %34, %36 : vector<8x784xf32>
    %cst_27 = arith.constant 5.000000e-01 : f32
    %38 = vector.broadcast %cst_27 : f32 to vector<8x784xf32>
    %39 = arith.mulf %38, %37 : vector<8x784xf32>
    %40 = math.tanh %39 : vector<8x784xf32>
    %cst_28 = arith.constant 5.000000e-01 : f32
    %41 = vector.broadcast %cst_28 : f32 to vector<8x784xf32>
    %42 = arith.mulf %41, %40 : vector<8x784xf32>
    %cst_29 = arith.constant 5.000000e-01 : f32
    %43 = vector.broadcast %cst_29 : f32 to vector<8x784xf32>
    %44 = arith.addf %42, %43 : vector<8x784xf32>
    %45 = arith.truncf %44 : vector<8x784xf32> to vector<8x784xbf16>
    %c0_30 = arith.constant 0 : index
    %c0_31 = arith.constant 0 : index
    %46 = vector.load %arg11[%c0_30, %c0_31] : memref<8x784xbf16, #tpu.memory_space<vmem>>, vector<8x784xbf16>
    tpu.vector_store %arg11[%c0_30, %c0_31], %45 {strides = array<i32>} : memref<8x784xbf16, #tpu.memory_space<vmem>>, vector<8x784xbf16>,
    return
  }
  func.func @transform_0(%arg0: i32) -> (i32, i32) {
    %c0_i32 = arith.constant 0 : i32
    %c0_i32_0 = arith.constant 0 : i32
    return %arg0, %c0_i32 : i32, i32
  }
  func.func @transform_1(%arg0: i32) -> (i32, i32) {
    %c0_i32 = arith.constant 0 : i32
    %c0_i32_0 = arith.constant 0 : i32
    return %arg0, %c0_i32 : i32, i32
  }
  func.func @transform_2(%arg0: i32) -> (i32, i32) {
    %c0_i32 = arith.constant 0 : i32
    %c0_i32_0 = arith.constant 0 : i32
    %c0_i32_1 = arith.constant 0 : i32
    return %c0_i32, %c0_i32_0 : i32, i32
  }
  func.func @transform_3(%arg0: i32) -> (i32, i32) {
    %c0_i32 = arith.constant 0 : i32
    %c0_i32_0 = arith.constant 0 : i32
    %c0_i32_1 = arith.constant 0 : i32
    return %c0_i32, %c0_i32_0 : i32, i32
  }
  func.func @transform_4(%arg0: i32) -> (i32, i32) {
    %c0_i32 = arith.constant 0 : i32
    %c0_i32_0 = arith.constant 0 : i32
    %c0_i32_1 = arith.constant 0 : i32
    return %c0_i32, %c0_i32_0 : i32, i32
  }
  func.func @transform_5(%arg0: i32) -> (i32, i32) {
    %c0_i32 = arith.constant 0 : i32
    %c0_i32_0 = arith.constant 0 : i32
    %c0_i32_1 = arith.constant 0 : i32
    return %c0_i32, %c0_i32_0 : i32, i32
  }
  func.func @transform_6(%arg0: i32) -> (i32, i32) {
    %c0_i32 = arith.constant 0 : i32
    %c0_i32_0 = arith.constant 0 : i32
    %c0_i32_1 = arith.constant 0 : i32
    return %c0_i32, %c0_i32_0 : i32, i32
  }
  func.func @transform_7(%arg0: i32) -> (i32, i32) {
    %c0_i32 = arith.constant 0 : i32
    %c0_i32_0 = arith.constant 0 : i32
    %c0_i32_1 = arith.constant 0 : i32
    return %c0_i32, %c0_i32_0 : i32, i32
  }
  func.func @transform_8(%arg0: i32) -> (i32, i32) {
    %c0_i32 = arith.constant 0 : i32
    %c0_i32_0 = arith.constant 0 : i32
    %c0_i32_1 = arith.constant 0 : i32
    return %c0_i32, %c0_i32_0 : i32, i32
  }
  func.func @transform_9(%arg0: i32) -> (i32, i32) {
    %c0_i32 = arith.constant 0 : i32
    %c0_i32_0 = arith.constant 0 : i32
    %c0_i32_1 = arith.constant 0 : i32
    return %c0_i32, %c0_i32_0 : i32, i32
  }
  func.func @transform_10(%arg0: i32) -> (i32, i32) {
    %c0_i32 = arith.constant 0 : i32
    %c0_i32_0 = arith.constant 0 : i32
    return %arg0, %c0_i32 : i32, i32
  }
  func.func @transform_11(%arg0: i32) -> (i32, i32) {
    %c0_i32 = arith.constant 0 : i32
    %c0_i32_0 = arith.constant 0 : i32
    return %arg0, %c0_i32 : i32, i32
  }
}

</mosaic_0001>

<bundles_post_ra>
// kernel: tpu_custom_call.1
= control target key start
LH: loop header
LB: loop body
LE: loop exit
PB: predicated region body
PF: predicated region fallthrough
CT: control target
= control target key end

     0   :  { %17 = vsyncpa [#allocation3], 0  ;;  %vm1266_vm0 = vcmask 130048   ;;  %s7480_s0 = inlined_call_operand.vmem [shape: bf16[8,784], index: 0, kind: input, shape index: {}]   ;;  %s7481_s1 = inlined_call_operand.vmem [shape: bf16[8,128], index: 1, kind: input, shape index: {}]   ;;  %s7482_s2 = inlined_call_operand.vmem [shape: bf16[784,512], index: 2, kind: input, shape index: {}]   ;;  %s7483_s3 = inlined_call_operand.vmem [shape: f32[1,512], index: 3, kind: input, shape index: {}]   ;;  %s7484_s4 = inlined_call_operand.vmem [shape: bf16[512,256], index: 4, kind: input, shape index: {}]   ;;  %s7485_s5 = inlined_call_operand.vmem [shape: f32[1,256], index: 5, kind: input, shape index: {}]   ;;  %s7486_s6 = inlined_call_operand.vmem [shape: bf16[128,512], index: 6, kind: input, shape index: {}]   ;;  %s7487_s7 = inlined_call_operand.vmem [shape: f32[1,512], index: 7, kind: input, shape index: {}]   ;;  %s7488_s8 = inlined_call_operand.vmem [shape: bf16[512,784], index: 8, kind: input, shape index: {}]   ;;  %s7489_s9 = inlined_call_operand.vmem [shape: f32[1,784], index: 9, kind: input, shape index: {}]   ;;  %s7490_s10 = inlined_call_operand.hbm [shape: bf16[8,784], index: 10, kind: output, shape index: {0}]   ;;  %s7491_s11 = inlined_call_operand.hbm [shape: f32[8,256], index: 11, kind: output, shape index: {1}]  }
   0x1   :  { %v4891_v0 = vld [vmem:[%s7482_s2 + $0x4] ss:$16 sps:$4 sm:$0xff]   ;;  %v4893_v1 = vld [vmem:[%s7482_s2 + $0xc] ss:$16 sps:$4 sm:$0xff]   ;;  %v4895_v2 = vld [vmem:[%s7482_s2] ss:$16 sps:$4 sm:$0xff]  }
   0x2   :  { %1270 = vmatprep.subr.bf16.mxu0 %v4891_v0  ;;  %v4896_v3 = vld [vmem:[%s7482_s2 + $0x8] ss:$16 sps:$4 sm:$0xff]   ;;  %1434 = vmatprep.subr.bf16.mxu1 %v4893_v1  ;;  %v4897_v4 = vld [vmem:[%s7482_s2 + $0x24] ss:$16 sps:$4 sm:$0xff]   ;;  %v4899_v5 = vld [vmem:[%s7482_s2 + $0x2c] ss:$16 sps:$4 sm:$0xff]  }
   0x3   :  { %1271 = vmatpush1.bf16.msra.mxu0 %v4895_v2  ;;  %1435 = vmatpush1.bf16.msra.mxu1 %v4896_v3  ;;  %v4901_v6 = vld [vmem:[%s7482_s2 + $0x20] ss:$16 sps:$4 sm:$0xff]   ;;  %v4902_v7 = vld [vmem:[%s7482_s2 + $0x28] ss:$16 sps:$4 sm:$0xff]   ;;  %v4903_v8 = vld [vmem:[%s7482_s2 + $0x44] ss:$16 sps:$4 sm:$0xff]  }
   0x4   :  { %1272 = vmatprep.subr.bf16.mxu0 %v4897_v4  ;;  %1436 = vmatprep.subr.bf16.mxu1 %v4899_v5  ;;  %v4905_v9 = vld [vmem:[%s7482_s2 + $0x4c] ss:$16 sps:$4 sm:$0xff]   ;;  %v4907_v10 = vld [vmem:[%s7482_s2 + $0x40] ss:$16 sps:$4 sm:$0xff]   ;;  %v4908_v11 = vld [vmem:[%s7482_s2 + $0x48] ss:$16 sps:$4 sm:$0xff]  }
   0x5   :  { %v4909_v12 = vld [vmem:[%s7482_s2 + $0x64] ss:$16 sps:$4 sm:$0xff]   ;;  %v4911_v13 = vld [vmem:[%s7482_s2 + $0x6c] ss:$16 sps:$4 sm:$0xff]   ;;  %v4913_v14 = vld [vmem:[%s7482_s2 + $0x60] ss:$16 sps:$4 sm:$0xff]  }
   0x6   :  { %v4914_v15 = vld [vmem:[%s7482_s2 + $0x68] ss:$16 sps:$4 sm:$0xff]   ;;  %v4915_v16 = vld [vmem:[%s7482_s2 + $0x84] ss:$16 sps:$4 sm:$0xff]   ;;  %v4917_v17 = vld [vmem:[%s7482_s2 + $0x8c] ss:$16 sps:$4 sm:$0xff]  }
   0x7   :  { %1273 = vmatpush1.bf16.msra.mxu0 %v4901_v6  ;;  %1437 = vmatpush1.bf16.msra.mxu1 %v4902_v7  ;;  %v4919_v18 = vld [vmem:[%s7482_s2 + $0x80] ss:$16 sps:$4 sm:$0xff]   ;;  %v4920_v19 = vld [vmem:[%s7482_s2 + $0x88] ss:$16 sps:$4 sm:$0xff]   ;;  %v4921_v20 = vld [vmem:[%s7482_s2 + $0xa4] ss:$16 sps:$4 sm:$0xff]  }
   0x8   :  { %1274 = vmatprep.subr.bf16.mxu0 %v4903_v8  ;;  %1438 = vmatprep.subr.bf16.mxu1 %v4905_v9  ;;  %v4923_v21 = vld [vmem:[%s7482_s2 + $0xac] ss:$16 sps:$4 sm:$0xff]   ;;  %v4925_v22 = vld [vmem:[%s7482_s2 + $0xa0] ss:$16 sps:$4 sm:$0xff]   ;;  %v4926_v23 = vld [vmem:[%s7482_s2 + $0xa8] ss:$16 sps:$4 sm:$0xff]  }
   0x9   :  { %v4927_v24 = vld [vmem:[%s7482_s2 + $0xc4] ss:$16 sps:$4 sm:$0xff]   ;;  %v4929_v25 = vld [vmem:[%s7482_s2 + $0xcc] ss:$16 sps:$4 sm:$0xff]   ;;  %v4931_v26 = vld [vmem:[%s7482_s2 + $0xc0] ss:$16 sps:$4 sm:$0xff]  }
   0xa   :  { %v4932_v27 = vld [vmem:[%s7482_s2 + $0xc8] ss:$16 sps:$4 sm:$0xff]   ;;  %v4933_v28 = vld [vmem:[%s7482_s2 + $0xe4] ss:$16 sps:$4 sm:$0xff]   ;;  %v4935_v29 = vld [vmem:[%s7482_s2 + $0xec] ss:$16 sps:$4 sm:$0xff]  }
   0xb   :  { %1275 = vmatpush1.bf16.msra.mxu0 %v4907_v10  ;;  %1439 = vmatpush1.bf16.msra.mxu1 %v4908_v11  ;;  %v4937_v30 = vld [vmem:[%s7482_s2 + $0xe0] ss:$16 sps:$4 sm:$0xff]   ;;  %v4938_v31 = vld [vmem:[%s7482_s2 + $0xe8] ss:$16 sps:$4 sm:$0xff]   ;;  %v4939_v32 = vld [vmem:[%s7482_s2 + $0x104] ss:$16 sps:$4 sm:$0xff]  }
   0xc   :  { %1276 = vmatprep.subr.bf16.mxu0 %v4909_v12  ;;  %1440 = vmatprep.subr.bf16.mxu1 %v4911_v13  ;;  %v4941_v33 = vld [vmem:[%s7482_s2 + $0x10c] ss:$16 sps:$4 sm:$0xff]   ;;  %v4943_v34 = vld [vmem:[%s7482_s2 + $0x100] ss:$16 sps:$4 sm:$0xff]   ;;  %v4944_v35 = vld [vmem:[%s7482_s2 + $0x108] ss:$16 sps:$4 sm:$0xff]  }
   0xd   :  { %v4945_v36 = vld [vmem:[%s7482_s2 + $0x124] ss:$16 sps:$4 sm:$0xff]   ;;  %v4947_v37 = vld [vmem:[%s7482_s2 + $0x12c] ss:$16 sps:$4 sm:$0xff]   ;;  %v4949_v38 = vld [vmem:[%s7482_s2 + $0x120] ss:$16 sps:$4 sm:$0xff]  }
   0xe   :  { %v4950_v39 = vld [vmem:[%s7482_s2 + $0x128] ss:$16 sps:$4 sm:$0xff]   ;;  %v4951_v40 = vld [vmem:[%s7482_s2 + $0x144] ss:$16 sps:$4 sm:$0xff]   ;;  %v4953_v41 = vld [vmem:[%s7482_s2 + $0x14c] ss:$16 sps:$4 sm:$0xff]  }
   0xf   :  { %1277 = vmatpush1.bf16.msra.mxu0 %v4913_v14  ;;  %1441 = vmatpush1.bf16.msra.mxu1 %v4914_v15  ;;  %v4955_v42 = vld [vmem:[%s7482_s2 + $0x140] ss:$16 sps:$4 sm:$0xff]   ;;  %v4956_v43 = vld [vmem:[%s7482_s2 + $0x148] ss:$16 sps:$4 sm:$0xff]   ;;  %v4957_v44 = vld [vmem:[%s7482_s2 + $0x164] ss:$16 sps:$4 sm:$0xff]  }
  0x10   :  { %1278 = vmatprep.subr.bf16.mxu0 %v4915_v16  ;;  %1442 = vmatprep.subr.bf16.mxu1 %v4917_v17  ;;  %v4959_v45 = vld [vmem:[%s7482_s2 + $0x16c] ss:$16 sps:$4 sm:$0xff]   ;;  %v40_v46 = vld [vmem:[%s7480_s0] sm:$0xff]  ;;  %v4962_v49 = vld [vmem:[%s7482_s2 + $0x168] ss:$16 sps:$4 sm:$0xff]  }
  0x11   :  { %v4961_v47 = vld [vmem:[%s7482_s2 + $0x160] ss:$16 sps:$4 sm:$0xff]   ;;  %v4260_v48 = vcombine.high %v40_v46, %v40_v46  ;;  %v4963_v50 = vld [vmem:[%s7482_s2 + $0x184] ss:$16 sps:$4 sm:$0xff]   ;;  %v4965_v51 = vld [vmem:[%s7482_s2 + $0x18c] ss:$16 sps:$4 sm:$0xff]   ;;  %v4259_v4 = vcombine.low %v40_v46, %v40_v46 }
  0x12   :  { %v4967_v52 = vld [vmem:[%s7482_s2 + $0x180] ss:$16 sps:$4 sm:$0xff]   ;;  %v4968_v53 = vld [vmem:[%s7482_s2 + $0x188] ss:$16 sps:$4 sm:$0xff]   ;;  %v4969_v54 = vld [vmem:[%s7482_s2 + $0x1a4] ss:$16 sps:$4 sm:$0xff]  }
  0x13   :  { %1279 = vmatpush1.bf16.msra.mxu0 %v4919_v18  ;;  %1443 = vmatpush1.bf16.msra.mxu1 %v4920_v19  ;;  %v4971_v55 = vld [vmem:[%s7482_s2 + $0x1ac] ss:$16 sps:$4 sm:$0xff]   ;;  %v4973_v56 = vld [vmem:[%s7482_s2 + $0x1a0] ss:$16 sps:$4 sm:$0xff]   ;;  %v4974_v57 = vld [vmem:[%s7482_s2 + $0x1a8] ss:$16 sps:$4 sm:$0xff]  }
  0x14   :  { %1280 = vmatprep.subr.bf16.mxu0 %v4921_v20  ;;  %1444 = vmatprep.subr.bf16.mxu1 %v4923_v21  ;;  %v4975_v58 = vld [vmem:[%s7482_s2 + $0x1c4] ss:$16 sps:$4 sm:$0xff]   ;;  %v4977_v59 = vld [vmem:[%s7482_s2 + $0x1cc] ss:$16 sps:$4 sm:$0xff]   ;;  %v4979_v60 = vld [vmem:[%s7482_s2 + $0x1c0] ss:$16 sps:$4 sm:$0xff]  }
  0x15   :  { %1302 = vmatprep.mubr.bf16.mxu0 %v4260_v48  ;;  %1466 = vmatprep.mubr.bf16.mxu1 %v4260_v48  ;;  %v4980_v61 = vld [vmem:[%s7482_s2 + $0x1c8] ss:$16 sps:$4 sm:$0xff]   ;;  %v4981_v62 = vld [vmem:[%s7482_s2 + $0x1e4] ss:$16 sps:$4 sm:$0xff]   ;;  %v4983_v63 = vld [vmem:[%s7482_s2 + $0x1ec] ss:$16 sps:$4 sm:$0xff]  }
  0x16   :  { %v4985_v0 = vld [vmem:[%s7482_s2 + $0x1e0] ss:$16 sps:$4 sm:$0xff]   ;;  %v4986_v1 = vld [vmem:[%s7482_s2 + $0x1e8] ss:$16 sps:$4 sm:$0xff]   ;;  %v4991_v2 = vld [vmem:[%s7482_s2 + $0x204] ss:$16 sps:$4 sm:$0xff]  }
  0x17   :  { %1281 = vmatpush1.bf16.msra.mxu0 %v4925_v22  ;;  %1445 = vmatpush1.bf16.msra.mxu1 %v4926_v23  ;;  %v4994_v3 = vld [vmem:[%s7482_s2 + $0x20c] ss:$16 sps:$4 sm:$0xff]   ;;  %v4989_v5 = vld [vmem:[%s7482_s2 + $0x200] ss:$16 sps:$4 sm:$0xff]   ;;  %v4992_v6 = vld [vmem:[%s7482_s2 + $0x208] ss:$16 sps:$4 sm:$0xff]  }
  0x18   :  { %1282 = vmatprep.subr.bf16.mxu0 %v4927_v24  ;;  %1446 = vmatprep.subr.bf16.mxu1 %v4929_v25  ;;  %v4997_v7 = vld [vmem:[%s7482_s2 + $0x224] ss:$16 sps:$4 sm:$0xff]   ;;  %v5000_v8 = vld [vmem:[%s7482_s2 + $0x22c] ss:$16 sps:$4 sm:$0xff]   ;;  %v4995_v9 = vld [vmem:[%s7482_s2 + $0x220] ss:$16 sps:$4 sm:$0xff]  }
  0x19   :  { %v4998_v10 = vld [vmem:[%s7482_s2 + $0x228] ss:$16 sps:$4 sm:$0xff]   ;;  %v5003_v11 = vld [vmem:[%s7482_s2 + $0x244] ss:$16 sps:$4 sm:$0xff]   ;;  %v5006_v12 = vld [vmem:[%s7482_s2 + $0x24c] ss:$16 sps:$4 sm:$0xff]  }
  0x1a   :  { %v5001_v13 = vld [vmem:[%s7482_s2 + $0x240] ss:$16 sps:$4 sm:$0xff]   ;;  %v5004_v14 = vld [vmem:[%s7482_s2 + $0x248] ss:$16 sps:$4 sm:$0xff]   ;;  %v5009_v15 = vld [vmem:[%s7482_s2 + $0x264] ss:$16 sps:$4 sm:$0xff]  }
  0x1b   :  { %1283 = vmatpush1.bf16.msra.mxu0 %v4931_v26  ;;  %1447 = vmatpush1.bf16.msra.mxu1 %v4932_v27  ;;  %v5012_v16 = vld [vmem:[%s7482_s2 + $0x26c] ss:$16 sps:$4 sm:$0xff]   ;;  %v5007_v17 = vld [vmem:[%s7482_s2 + $0x260] ss:$16 sps:$4 sm:$0xff]   ;;  %v5010_v18 = vld [vmem:[%s7482_s2 + $0x268] ss:$16 sps:$4 sm:$0xff]  }
  0x1c   :  { %1284 = vmatprep.subr.bf16.mxu0 %v4933_v28  ;;  %1448 = vmatprep.subr.bf16.mxu1 %v4935_v29  ;;  %v5015_v19 = vld [vmem:[%s7482_s2 + $0x284] ss:$16 sps:$4 sm:$0xff]   ;;  %v5018_v20 = vld [vmem:[%s7482_s2 + $0x28c] ss:$16 sps:$4 sm:$0xff]   ;;  %v5013_v21 = vld [vmem:[%s7482_s2 + $0x280] ss:$16 sps:$4 sm:$0xff]  }
  0x1d   :  { %v5016_v22 = vld [vmem:[%s7482_s2 + $0x288] ss:$16 sps:$4 sm:$0xff]   ;;  %v5021_v23 = vld [vmem:[%s7482_s2 + $0x2a4] ss:$16 sps:$4 sm:$0xff]   ;;  %v5024_v24 = vld [vmem:[%s7482_s2 + $0x2ac] ss:$16 sps:$4 sm:$0xff]  }
  0x1e   :  { %v5019_v25 = vld [vmem:[%s7482_s2 + $0x2a0] ss:$16 sps:$4 sm:$0xff]   ;;  %v5022_v26 = vld [vmem:[%s7482_s2 + $0x2a8] ss:$16 sps:$4 sm:$0xff]   ;;  %v5027_v27 = vld [vmem:[%s7482_s2 + $0x2c4] ss:$16 sps:$4 sm:$0xff]  }
  0x1f   :  { %1285 = vmatpush1.bf16.msra.mxu0 %v4937_v30  ;;  %1449 = vmatpush1.bf16.msra.mxu1 %v4938_v31  ;;  %v5030_v28 = vld [vmem:[%s7482_s2 + $0x2cc] ss:$16 sps:$4 sm:$0xff]   ;;  %v5025_v31 = vld [vmem:[%s7482_s2 + $0x2c0] ss:$16 sps:$4 sm:$0xff]   ;;  %v5052_v48 = vld [vmem:[%s7482_s2 + $0x348] ss:$16 sps:$4 sm:$0xff]  }
  0x20   :  { %1286 = vmatprep.subr.bf16.mxu0 %v4939_v32  ;;  %1450 = vmatprep.subr.bf16.mxu1 %v4941_v33  ;;  %v6059_v29 = vld [vmem:[%s7480_s0 + $0x8] sm:$0xff]  ;;  %v5033_v33 = vld [vmem:[%s7482_s2 + $0x2e4] ss:$16 sps:$4 sm:$0xff]  }
  0x21   :  { %v4262_v30 = vcombine.high %v6059_v29, %v6059_v29  ;;  %v5028_v32 = vld [vmem:[%s7482_s2 + $0x2c8] ss:$16 sps:$4 sm:$0xff]   ;;  %v5054_v46 = vld [vmem:[%s7482_s2 + $0x34c] ss:$16 sps:$4 sm:$0xff]  }
  0x23   :  { %1287 = vmatpush1.bf16.msra.mxu0 %v4943_v34  ;;  %1451 = vmatpush1.bf16.msra.mxu1 %v4944_v35  ;;  %v5036_v34 = vld [vmem:[%s7482_s2 + $0x2ec] ss:$16 sps:$4 sm:$0xff]   ;;  %v5031_v35 = vld [vmem:[%s7482_s2 + $0x2e0] ss:$16 sps:$4 sm:$0xff]  }
  0x24   :  { %1288 = vmatprep.subr.bf16.mxu0 %v4945_v36  ;;  %1452 = vmatprep.subr.bf16.mxu1 %v4947_v37  ;;  %v5034_v36 = vld [vmem:[%s7482_s2 + $0x2e8] ss:$16 sps:$4 sm:$0xff]   ;;  %v5039_v37 = vld [vmem:[%s7482_s2 + $0x304] ss:$16 sps:$4 sm:$0xff]  }
  0x27   :  { %1289 = vmatpush1.bf16.msra.mxu0 %v4949_v38  ;;  %1453 = vmatpush1.bf16.msra.mxu1 %v4950_v39  ;;  %v5042_v38 = vld [vmem:[%s7482_s2 + $0x30c] ss:$16 sps:$4 sm:$0xff]   ;;  %v5037_v39 = vld [vmem:[%s7482_s2 + $0x300] ss:$16 sps:$4 sm:$0xff]  }
  0x28   :  { %1290 = vmatprep.subr.bf16.mxu0 %v4951_v40  ;;  %1454 = vmatprep.subr.bf16.mxu1 %v4953_v41  ;;  %v5040_v40 = vld [vmem:[%s7482_s2 + $0x308] ss:$16 sps:$4 sm:$0xff]   ;;  %v5045_v41 = vld [vmem:[%s7482_s2 + $0x324] ss:$16 sps:$4 sm:$0xff]  }
  0x2b   :  { %1291 = vmatpush1.bf16.msra.mxu0 %v4955_v42  ;;  %1455 = vmatpush1.bf16.msra.mxu1 %v4956_v43  ;;  %v5048_v42 = vld [vmem:[%s7482_s2 + $0x32c] ss:$16 sps:$4 sm:$0xff]   ;;  %v5043_v43 = vld [vmem:[%s7482_s2 + $0x320] ss:$16 sps:$4 sm:$0xff]  }
  0x2c   :  { %1292 = vmatprep.subr.bf16.mxu0 %v4957_v44  ;;  %1456 = vmatprep.subr.bf16.mxu1 %v4959_v45  ;;  %v5046_v44 = vld [vmem:[%s7482_s2 + $0x328] ss:$16 sps:$4 sm:$0xff]   ;;  %v5051_v45 = vld [vmem:[%s7482_s2 + $0x344] ss:$16 sps:$4 sm:$0xff]  }
  0x2f   :  { %1293 = vmatpush1.bf16.msra.mxu0 %v4961_v47  ;;  %1457 = vmatpush1.bf16.msra.mxu1 %v4962_v49  ;;  %v5049_v47 = vld [vmem:[%s7482_s2 + $0x340] ss:$16 sps:$4 sm:$0xff]   ;;  %v5057_v49 = vld [vmem:[%s7482_s2 + $0x364] ss:$16 sps:$4 sm:$0xff]  }
  0x30   :  { %1294 = vmatprep.subr.bf16.mxu0 %v4963_v50  ;;  %1458 = vmatprep.subr.bf16.mxu1 %v4965_v51  ;;  %v5060_v50 = vld [vmem:[%s7482_s2 + $0x36c] ss:$16 sps:$4 sm:$0xff]   ;;  %v5055_v51 = vld [vmem:[%s7482_s2 + $0x360] ss:$16 sps:$4 sm:$0xff]  }
  0x33   :  { %1295 = vmatpush1.bf16.msra.mxu0 %v4967_v52  ;;  %1459 = vmatpush1.bf16.msra.mxu1 %v4968_v53  ;;  %v5058_v52 = vld [vmem:[%s7482_s2 + $0x368] ss:$16 sps:$4 sm:$0xff]   ;;  %v5063_v53 = vld [vmem:[%s7482_s2 + $0x384] ss:$16 sps:$4 sm:$0xff]  }
  0x34   :  { %1296 = vmatprep.subr.bf16.mxu0 %v4969_v54  ;;  %1460 = vmatprep.subr.bf16.mxu1 %v4971_v55  ;;  %v5066_v54 = vld [vmem:[%s7482_s2 + $0x38c] ss:$16 sps:$4 sm:$0xff]   ;;  %v5061_v55 = vld [vmem:[%s7482_s2 + $0x380] ss:$16 sps:$4 sm:$0xff]  }
  0x37   :  { %1297 = vmatpush1.bf16.msra.mxu0 %v4973_v56  ;;  %1461 = vmatpush1.bf16.msra.mxu1 %v4974_v57  ;;  %v5064_v56 = vld [vmem:[%s7482_s2 + $0x388] ss:$16 sps:$4 sm:$0xff]   ;;  %v5069_v57 = vld [vmem:[%s7482_s2 + $0x3a4] ss:$16 sps:$4 sm:$0xff]  }
  0x38   :  { %1298 = vmatprep.subr.bf16.mxu0 %v4975_v58  ;;  %1462 = vmatprep.subr.bf16.mxu1 %v4977_v59  ;;  %v5072_v58 = vld [vmem:[%s7482_s2 + $0x3ac] ss:$16 sps:$4 sm:$0xff]   ;;  %v5067_v59 = vld [vmem:[%s7482_s2 + $0x3a0] ss:$16 sps:$4 sm:$0xff]  }
  0x3b   :  { %1299 = vmatpush1.bf16.msra.mxu0 %v4979_v60  ;;  %1463 = vmatpush1.bf16.msra.mxu1 %v4980_v61  ;;  %v5070_v60 = vld [vmem:[%s7482_s2 + $0x3a8] ss:$16 sps:$4 sm:$0xff]   ;;  %v5075_v61 = vld [vmem:[%s7482_s2 + $0x3c4] ss:$16 sps:$4 sm:$0xff]  }
  0x3c   :  { %1300 = vmatprep.subr.bf16.mxu0 %v4981_v62  ;;  %1464 = vmatprep.subr.bf16.mxu1 %v4983_v63  ;;  %v5078_v62 = vld [vmem:[%s7482_s2 + $0x3cc] ss:$16 sps:$4 sm:$0xff]   ;;  %v5073_v63 = vld [vmem:[%s7482_s2 + $0x3c0] ss:$16 sps:$4 sm:$0xff]  }
  0x3f   :  { %1301 = vmatpush1.bf16.msra.mxu0 %v4985_v0  ;;  %1465 = vmatpush1.bf16.msra.mxu1 %v4986_v1  ;;  %v5076_v0 = vld [vmem:[%s7482_s2 + $0x3c8] ss:$16 sps:$4 sm:$0xff]   ;;  %v5081_v1 = vld [vmem:[%s7482_s2 + $0x3e4] ss:$16 sps:$4 sm:$0xff]  }
  0x40   :  { %1311 = vmatprep.subr.bf16.mxu0 %v4991_v2  ;;  %1475 = vmatprep.subr.bf16.mxu1 %v4994_v3  ;;  %v5084_v2 = vld [vmem:[%s7482_s2 + $0x3ec] ss:$16 sps:$4 sm:$0xff]   ;;  %v5079_v3 = vld [vmem:[%s7482_s2 + $0x3e0] ss:$16 sps:$4 sm:$0xff]  }
  0x42   :  { %1303 = vmatmul.mubr.bf16.vlgmr.msra.gmra.mrb[0].mxu0 %v4259_v4  ;;  %1467 = vmatmul.mubr.bf16.vlgmr.msra.gmra.mrb[0].mxu1 %v4259_v4  ;;  %v5082_v4 = vld [vmem:[%s7482_s2 + $0x3e8] ss:$16 sps:$4 sm:$0xff]  }
  0x43   :  { %1312 = vmatpush1.bf16.msra.mxu0 %v4989_v5  ;;  %1476 = vmatpush1.bf16.msra.mxu1 %v4992_v6  ;;  %v5089_v5 = vld [vmem:[%s7482_s2 + $0x404] ss:$16 sps:$4 sm:$0xff]   ;;  %v5092_v6 = vld [vmem:[%s7482_s2 + $0x40c] ss:$16 sps:$4 sm:$0xff]  }
  0x44   :  { %1313 = vmatprep.subr.bf16.mxu0 %v4997_v7  ;;  %1477 = vmatprep.subr.bf16.mxu1 %v5000_v8  ;;  %v4261_v7 = vcombine.low %v6059_v29, %v6059_v29  ;;  %v5087_v8 = vld [vmem:[%s7482_s2 + $0x400] ss:$16 sps:$4 sm:$0xff]   ;;  %v5122_v29 = vld [vmem:[%s7482_s2 + $0x4ac] ss:$16 sps:$4 sm:$0xff]  }
  0x45   :  { %1343 = vmatprep.mubr.bf16.mxu0 %v4262_v30  ;;  %1507 = vmatprep.mubr.bf16.mxu1 %v4262_v30  ;;  %v5117_v30 = vld [vmem:[%s7482_s2 + $0x4a0] ss:$16 sps:$4 sm:$0xff]  }
  0x47   :  { %1314 = vmatpush1.bf16.msra.mxu0 %v4995_v9  ;;  %1478 = vmatpush1.bf16.msra.mxu1 %v4998_v10  ;;  %v5090_v9 = vld [vmem:[%s7482_s2 + $0x408] ss:$16 sps:$4 sm:$0xff]   ;;  %v5095_v10 = vld [vmem:[%s7482_s2 + $0x424] ss:$16 sps:$4 sm:$0xff]  }
  0x48   :  { %1315 = vmatprep.subr.bf16.mxu0 %v5003_v11  ;;  %1479 = vmatprep.subr.bf16.mxu1 %v5006_v12  ;;  %v6197_v11 = vld [vmem:[%s7480_s0 + $0x10] sm:$0xff]  ;;  %v5098_v12 = vld [vmem:[%s7482_s2 + $0x42c] ss:$16 sps:$4 sm:$0xff]  }
  0x4b   :  { %1316 = vmatpush1.bf16.msra.mxu0 %v5001_v13  ;;  %1480 = vmatpush1.bf16.msra.mxu1 %v5004_v14  ;;  %v4264_v13 = vcombine.high %v6197_v11, %v6197_v11  ;;  %v5093_v14 = vld [vmem:[%s7482_s2 + $0x420] ss:$16 sps:$4 sm:$0xff]  }
  0x4c   :  { %1317 = vmatprep.subr.bf16.mxu0 %v5009_v15  ;;  %1481 = vmatprep.subr.bf16.mxu1 %v5012_v16  ;;  %v5096_v15 = vld [vmem:[%s7482_s2 + $0x428] ss:$16 sps:$4 sm:$0xff]   ;;  %v5101_v16 = vld [vmem:[%s7482_s2 + $0x444] ss:$16 sps:$4 sm:$0xff]  }
  0x4f   :  { %1318 = vmatpush1.bf16.msra.mxu0 %v5007_v17  ;;  %1482 = vmatpush1.bf16.msra.mxu1 %v5010_v18  ;;  %v5104_v17 = vld [vmem:[%s7482_s2 + $0x44c] ss:$16 sps:$4 sm:$0xff]   ;;  %v5099_v18 = vld [vmem:[%s7482_s2 + $0x440] ss:$16 sps:$4 sm:$0xff]  }
  0x50   :  { %1319 = vmatprep.subr.bf16.mxu0 %v5015_v19  ;;  %1483 = vmatprep.subr.bf16.mxu1 %v5018_v20  ;;  %v5102_v19 = vld [vmem:[%s7482_s2 + $0x448] ss:$16 sps:$4 sm:$0xff]   ;;  %v5107_v20 = vld [vmem:[%s7482_s2 + $0x464] ss:$16 sps:$4 sm:$0xff]  }
  0x53   :  { %1320 = vmatpush1.bf16.msra.mxu0 %v5013_v21  ;;  %1484 = vmatpush1.bf16.msra.mxu1 %v5016_v22  ;;  %v5110_v21 = vld [vmem:[%s7482_s2 + $0x46c] ss:$16 sps:$4 sm:$0xff]   ;;  %v5105_v22 = vld [vmem:[%s7482_s2 + $0x460] ss:$16 sps:$4 sm:$0xff]  }
  0x54   :  { %1321 = vmatprep.subr.bf16.mxu0 %v5021_v23  ;;  %1485 = vmatprep.subr.bf16.mxu1 %v5024_v24  ;;  %v5108_v23 = vld [vmem:[%s7482_s2 + $0x468] ss:$16 sps:$4 sm:$0xff]   ;;  %v5113_v24 = vld [vmem:[%s7482_s2 + $0x484] ss:$16 sps:$4 sm:$0xff]  }
  0x57   :  { %1322 = vmatpush1.bf16.msra.mxu0 %v5019_v25  ;;  %1486 = vmatpush1.bf16.msra.mxu1 %v5022_v26  ;;  %v5116_v25 = vld [vmem:[%s7482_s2 + $0x48c] ss:$16 sps:$4 sm:$0xff]   ;;  %v5111_v26 = vld [vmem:[%s7482_s2 + $0x480] ss:$16 sps:$4 sm:$0xff]  }
  0x58   :  { %1323 = vmatprep.subr.bf16.mxu0 %v5027_v27  ;;  %1487 = vmatprep.subr.bf16.mxu1 %v5030_v28  ;;  %v5114_v27 = vld [vmem:[%s7482_s2 + $0x488] ss:$16 sps:$4 sm:$0xff]   ;;  %v5119_v28 = vld [vmem:[%s7482_s2 + $0x4a4] ss:$16 sps:$4 sm:$0xff]  }
  0x5b   :  { %1324 = vmatpush1.bf16.msra.mxu0 %v5025_v31  ;;  %1488 = vmatpush1.bf16.msra.mxu1 %v5028_v32  ;;  %v5120_v31 = vld [vmem:[%s7482_s2 + $0x4a8] ss:$16 sps:$4 sm:$0xff]   ;;  %v5125_v32 = vld [vmem:[%s7482_s2 + $0x4c4] ss:$16 sps:$4 sm:$0xff]  }
  0x5c   :  { %1325 = vmatprep.subr.bf16.mxu0 %v5033_v33  ;;  %1489 = vmatprep.subr.bf16.mxu1 %v5036_v34  ;;  %v5128_v33 = vld [vmem:[%s7482_s2 + $0x4cc] ss:$16 sps:$4 sm:$0xff]   ;;  %v5123_v34 = vld [vmem:[%s7482_s2 + $0x4c0] ss:$16 sps:$4 sm:$0xff]  }
  0x5f   :  { %1326 = vmatpush1.bf16.msra.mxu0 %v5031_v35  ;;  %1490 = vmatpush1.bf16.msra.mxu1 %v5034_v36  ;;  %v5126_v35 = vld [vmem:[%s7482_s2 + $0x4c8] ss:$16 sps:$4 sm:$0xff]   ;;  %v5131_v36 = vld [vmem:[%s7482_s2 + $0x4e4] ss:$16 sps:$4 sm:$0xff]  }
  0x60   :  { %1327 = vmatprep.subr.bf16.mxu0 %v5039_v37  ;;  %1491 = vmatprep.subr.bf16.mxu1 %v5042_v38  ;;  %v5134_v37 = vld [vmem:[%s7482_s2 + $0x4ec] ss:$16 sps:$4 sm:$0xff]   ;;  %v5129_v38 = vld [vmem:[%s7482_s2 + $0x4e0] ss:$16 sps:$4 sm:$0xff]  }
  0x63   :  { %1328 = vmatpush1.bf16.msra.mxu0 %v5037_v39  ;;  %1492 = vmatpush1.bf16.msra.mxu1 %v5040_v40  ;;  %v5132_v39 = vld [vmem:[%s7482_s2 + $0x4e8] ss:$16 sps:$4 sm:$0xff]   ;;  %v5137_v40 = vld [vmem:[%s7482_s2 + $0x504] ss:$16 sps:$4 sm:$0xff]  }
  0x64   :  { %1329 = vmatprep.subr.bf16.mxu0 %v5045_v41  ;;  %1493 = vmatprep.subr.bf16.mxu1 %v5048_v42  ;;  %v5140_v41 = vld [vmem:[%s7482_s2 + $0x50c] ss:$16 sps:$4 sm:$0xff]   ;;  %v5135_v42 = vld [vmem:[%s7482_s2 + $0x500] ss:$16 sps:$4 sm:$0xff]  }
  0x67   :  { %1330 = vmatpush1.bf16.msra.mxu0 %v5043_v43  ;;  %1494 = vmatpush1.bf16.msra.mxu1 %v5046_v44  ;;  %v5138_v43 = vld [vmem:[%s7482_s2 + $0x508] ss:$16 sps:$4 sm:$0xff]   ;;  %v5143_v44 = vld [vmem:[%s7482_s2 + $0x524] ss:$16 sps:$4 sm:$0xff]  }
  0x68   :  { %1331 = vmatprep.subr.bf16.mxu0 %v5051_v45  ;;  %1495 = vmatprep.subr.bf16.mxu1 %v5054_v46  ;;  %v5146_v45 = vld [vmem:[%s7482_s2 + $0x52c] ss:$16 sps:$4 sm:$0xff]   ;;  %v5141_v46 = vld [vmem:[%s7482_s2 + $0x520] ss:$16 sps:$4 sm:$0xff]  }
  0x6b   :  { %1332 = vmatpush1.bf16.msra.mxu0 %v5049_v47  ;;  %1496 = vmatpush1.bf16.msra.mxu1 %v5052_v48  ;;  %v5144_v47 = vld [vmem:[%s7482_s2 + $0x528] ss:$16 sps:$4 sm:$0xff]   ;;  %v5149_v48 = vld [vmem:[%s7482_s2 + $0x544] ss:$16 sps:$4 sm:$0xff]  }
  0x6c   :  { %1333 = vmatprep.subr.bf16.mxu0 %v5057_v49  ;;  %1497 = vmatprep.subr.bf16.mxu1 %v5060_v50  ;;  %v5152_v49 = vld [vmem:[%s7482_s2 + $0x54c] ss:$16 sps:$4 sm:$0xff]   ;;  %v5147_v50 = vld [vmem:[%s7482_s2 + $0x540] ss:$16 sps:$4 sm:$0xff]  }
  0x6f   :  { %1334 = vmatpush1.bf16.msra.mxu0 %v5055_v51  ;;  %1498 = vmatpush1.bf16.msra.mxu1 %v5058_v52  ;;  %v5150_v51 = vld [vmem:[%s7482_s2 + $0x548] ss:$16 sps:$4 sm:$0xff]   ;;  %v5155_v52 = vld [vmem:[%s7482_s2 + $0x564] ss:$16 sps:$4 sm:$0xff]  }
  0x70   :  { %1335 = vmatprep.subr.bf16.mxu0 %v5063_v53  ;;  %1499 = vmatprep.subr.bf16.mxu1 %v5066_v54  ;;  %v5158_v53 = vld [vmem:[%s7482_s2 + $0x56c] ss:$16 sps:$4 sm:$0xff]   ;;  %v5153_v54 = vld [vmem:[%s7482_s2 + $0x560] ss:$16 sps:$4 sm:$0xff]  }
  0x73   :  { %1336 = vmatpush1.bf16.msra.mxu0 %v5061_v55  ;;  %1500 = vmatpush1.bf16.msra.mxu1 %v5064_v56  ;;  %v5156_v55 = vld [vmem:[%s7482_s2 + $0x568] ss:$16 sps:$4 sm:$0xff]   ;;  %v5161_v56 = vld [vmem:[%s7482_s2 + $0x584] ss:$16 sps:$4 sm:$0xff]  }
  0x74   :  { %1337 = vmatprep.subr.bf16.mxu0 %v5069_v57  ;;  %1501 = vmatprep.subr.bf16.mxu1 %v5072_v58  ;;  %v5164_v57 = vld [vmem:[%s7482_s2 + $0x58c] ss:$16 sps:$4 sm:$0xff]   ;;  %v5159_v58 = vld [vmem:[%s7482_s2 + $0x580] ss:$16 sps:$4 sm:$0xff]  }
  0x77   :  { %1338 = vmatpush1.bf16.msra.mxu0 %v5067_v59  ;;  %1502 = vmatpush1.bf16.msra.mxu1 %v5070_v60  ;;  %v5162_v59 = vld [vmem:[%s7482_s2 + $0x588] ss:$16 sps:$4 sm:$0xff]   ;;  %v5167_v60 = vld [vmem:[%s7482_s2 + $0x5a4] ss:$16 sps:$4 sm:$0xff]  }
  0x78   :  { %1339 = vmatprep.subr.bf16.mxu0 %v5075_v61  ;;  %1503 = vmatprep.subr.bf16.mxu1 %v5078_v62  ;;  %v5170_v61 = vld [vmem:[%s7482_s2 + $0x5ac] ss:$16 sps:$4 sm:$0xff]   ;;  %v5165_v62 = vld [vmem:[%s7482_s2 + $0x5a0] ss:$16 sps:$4 sm:$0xff]  }
  0x7b   :  { %1340 = vmatpush1.bf16.msra.mxu0 %v5073_v63  ;;  %1504 = vmatpush1.bf16.msra.mxu1 %v5076_v0  ;;  %v5168_v63 = vld [vmem:[%s7482_s2 + $0x5a8] ss:$16 sps:$4 sm:$0xff]   ;;  %v5173_v0 = vld [vmem:[%s7482_s2 + $0x5c4] ss:$16 sps:$4 sm:$0xff]  }
  0x7c   :  { %1341 = vmatprep.subr.bf16.mxu0 %v5081_v1  ;;  %1505 = vmatprep.subr.bf16.mxu1 %v5084_v2  ;;  %v5176_v1 = vld [vmem:[%s7482_s2 + $0x5cc] ss:$16 sps:$4 sm:$0xff]   ;;  %v5171_v2 = vld [vmem:[%s7482_s2 + $0x5c0] ss:$16 sps:$4 sm:$0xff]  }
  0x7f   :  { %1342 = vmatpush1.bf16.msra.mxu0 %v5079_v3  ;;  %1506 = vmatpush1.bf16.msra.mxu1 %v5082_v4  ;;  %v5174_v3 = vld [vmem:[%s7482_s2 + $0x5c8] ss:$16 sps:$4 sm:$0xff]   ;;  %v5179_v4 = vld [vmem:[%s7482_s2 + $0x5e4] ss:$16 sps:$4 sm:$0xff]  }
  0x80   :  { %1352 = vmatprep.subr.bf16.mxu0 %v5089_v5  ;;  %1516 = vmatprep.subr.bf16.mxu1 %v5092_v6  ;;  %v5182_v5 = vld [vmem:[%s7482_s2 + $0x5ec] ss:$16 sps:$4 sm:$0xff]   ;;  %v5177_v6 = vld [vmem:[%s7482_s2 + $0x5e0] ss:$16 sps:$4 sm:$0xff]  }
  0x82   :  { %1344 = vmatmul.mubr.bf16.vlgmr.msra.gmra.mrb[0].mxu0 %v4261_v7  ;;  %1508 = vmatmul.mubr.bf16.vlgmr.msra.gmra.mrb[0].mxu1 %v4261_v7  ;;  %v5180_v7 = vld [vmem:[%s7482_s2 + $0x5e8] ss:$16 sps:$4 sm:$0xff]  }
  0x83   :  { %1353 = vmatpush1.bf16.msra.mxu0 %v5087_v8  ;;  %1517 = vmatpush1.bf16.msra.mxu1 %v5090_v9  ;;  %v5187_v8 = vld [vmem:[%s7482_s2 + $0x604] ss:$16 sps:$4 sm:$0xff]   ;;  %v5190_v9 = vld [vmem:[%s7482_s2 + $0x60c] ss:$16 sps:$4 sm:$0xff]  }
  0x84   :  { %1354 = vmatprep.subr.bf16.mxu0 %v5095_v10  ;;  %1518 = vmatprep.subr.bf16.mxu1 %v5098_v12  ;;  %v5185_v10 = vld [vmem:[%s7482_s2 + $0x600] ss:$16 sps:$4 sm:$0xff]   ;;  %v5188_v12 = vld [vmem:[%s7482_s2 + $0x608] ss:$16 sps:$4 sm:$0xff]  }
  0x85   :  { %1384 = vmatprep.mubr.bf16.mxu0 %v4264_v13  ;;  %1548 = vmatprep.mubr.bf16.mxu1 %v4264_v13  ;;  %v4263_v13 = vcombine.low %v6197_v11, %v6197_v11  ;;  %v5191_v11 = vld [vmem:[%s7480_s0 + $0x18] ss:$0 sps:$4 sm:$0xff]  }
  0x87   :  { %1355 = vmatpush1.bf16.msra.mxu0 %v5093_v14  ;;  %1519 = vmatpush1.bf16.msra.mxu1 %v5096_v15  ;;  %v5194_v14 = vld [vmem:[%s7484_s4 + $0x4] ss:$8 sps:$4 sm:$0xff]   ;;  %v5720_v15 = vmov 0  }
  0x88   :  { %1356 = vmatprep.subr.bf16.mxu0 %v5101_v16  ;;  %1520 = vmatprep.subr.bf16.mxu1 %v5104_v17  ;;  %v5192_v16 = vld [vmem:[%s7484_s4] ss:$8 sps:$4 sm:$0xff]   ;;  %v5197_v17 = vld [vmem:[%s7484_s4 + $0x14] ss:$8 sps:$4 sm:$0xff]  }
  0x8b   :  { %1357 = vmatpush1.bf16.msra.mxu0 %v5099_v18  ;;  %1521 = vmatpush1.bf16.msra.mxu1 %v5102_v19  ;;  %v5195_v18 = vld [vmem:[%s7484_s4 + $0x10] ss:$8 sps:$4 sm:$0xff]   ;;  %v5200_v19 = vld [vmem:[%s7484_s4 + $0x24] ss:$8 sps:$4 sm:$0xff]  }
  0x8c   :  { %1358 = vmatprep.subr.bf16.mxu0 %v5107_v20  ;;  %1522 = vmatprep.subr.bf16.mxu1 %v5110_v21  ;;  %v5198_v20 = vld [vmem:[%s7484_s4 + $0x20] ss:$8 sps:$4 sm:$0xff]   ;;  %v5203_v21 = vld [vmem:[%s7484_s4 + $0x34] ss:$8 sps:$4 sm:$0xff]  }
  0x8f   :  { %1359 = vmatpush1.bf16.msra.mxu0 %v5105_v22  ;;  %1523 = vmatpush1.bf16.msra.mxu1 %v5108_v23  ;;  %v5201_v22 = vld [vmem:[%s7484_s4 + $0x30] ss:$8 sps:$4 sm:$0xff]   ;;  %v5206_v23 = vld [vmem:[%s7484_s4 + $0x44] ss:$8 sps:$4 sm:$0xff]  }
  0x90   :  { %1360 = vmatprep.subr.bf16.mxu0 %v5113_v24  ;;  %1524 = vmatprep.subr.bf16.mxu1 %v5116_v25  ;;  %v5204_v24 = vld [vmem:[%s7484_s4 + $0x40] ss:$8 sps:$4 sm:$0xff]   ;;  %v5209_v25 = vld [vmem:[%s7484_s4 + $0x54] ss:$8 sps:$4 sm:$0xff]  }
  0x93   :  { %1361 = vmatpush1.bf16.msra.mxu0 %v5111_v26  ;;  %1525 = vmatpush1.bf16.msra.mxu1 %v5114_v27  ;;  %v5207_v26 = vld [vmem:[%s7484_s4 + $0x50] ss:$8 sps:$4 sm:$0xff]   ;;  %v5212_v27 = vld [vmem:[%s7484_s4 + $0x64] ss:$8 sps:$4 sm:$0xff]  }
  0x94   :  { %1362 = vmatprep.subr.bf16.mxu0 %v5119_v28  ;;  %1526 = vmatprep.subr.bf16.mxu1 %v5122_v29  ;;  %v5210_v28 = vld [vmem:[%s7484_s4 + $0x60] ss:$8 sps:$4 sm:$0xff]   ;;  %v5215_v29 = vld [vmem:[%s7484_s4 + $0x74] ss:$8 sps:$4 sm:$0xff]  }
  0x97   :  { %1363 = vmatpush1.bf16.msra.mxu0 %v5117_v30  ;;  %1527 = vmatpush1.bf16.msra.mxu1 %v5120_v31  ;;  %v5213_v30 = vld [vmem:[%s7484_s4 + $0x70] ss:$8 sps:$4 sm:$0xff]   ;;  %v5218_v31 = vld [vmem:[%s7484_s4 + $0x84] ss:$8 sps:$4 sm:$0xff]  }
  0x98   :  { %1364 = vmatprep.subr.bf16.mxu0 %v5125_v32  ;;  %1528 = vmatprep.subr.bf16.mxu1 %v5128_v33  ;;  %v5216_v32 = vld [vmem:[%s7484_s4 + $0x80] ss:$8 sps:$4 sm:$0xff]   ;;  %v5221_v33 = vld [vmem:[%s7484_s4 + $0x94] ss:$8 sps:$4 sm:$0xff]  }
  0x9b   :  { %1365 = vmatpush1.bf16.msra.mxu0 %v5123_v34  ;;  %1529 = vmatpush1.bf16.msra.mxu1 %v5126_v35  ;;  %v5219_v34 = vld [vmem:[%s7484_s4 + $0x90] ss:$8 sps:$4 sm:$0xff]   ;;  %v5224_v35 = vld [vmem:[%s7484_s4 + $0xa4] ss:$8 sps:$4 sm:$0xff]  }
  0x9c   :  { %1366 = vmatprep.subr.bf16.mxu0 %v5131_v36  ;;  %1530 = vmatprep.subr.bf16.mxu1 %v5134_v37  ;;  %v5222_v36 = vld [vmem:[%s7484_s4 + $0xa0] ss:$8 sps:$4 sm:$0xff]   ;;  %v5227_v37 = vld [vmem:[%s7484_s4 + $0xb4] ss:$8 sps:$4 sm:$0xff]  }
  0x9f   :  { %1367 = vmatpush1.bf16.msra.mxu0 %v5129_v38  ;;  %1531 = vmatpush1.bf16.msra.mxu1 %v5132_v39  ;;  %v5225_v38 = vld [vmem:[%s7484_s4 + $0xb0] ss:$8 sps:$4 sm:$0xff]   ;;  %v5230_v39 = vld [vmem:[%s7484_s4 + $0xc4] ss:$8 sps:$4 sm:$0xff]  }
  0xa0   :  { %1368 = vmatprep.subr.bf16.mxu0 %v5137_v40  ;;  %1532 = vmatprep.subr.bf16.mxu1 %v5140_v41  ;;  %v5228_v40 = vld [vmem:[%s7484_s4 + $0xc0] ss:$8 sps:$4 sm:$0xff]   ;;  %v5233_v41 = vld [vmem:[%s7484_s4 + $0xd4] ss:$8 sps:$4 sm:$0xff]  }
  0xa3   :  { %1369 = vmatpush1.bf16.msra.mxu0 %v5135_v42  ;;  %1533 = vmatpush1.bf16.msra.mxu1 %v5138_v43  ;;  %v5231_v42 = vld [vmem:[%s7484_s4 + $0xd0] ss:$8 sps:$4 sm:$0xff]  }
  0xa4   :  { %1370 = vmatprep.subr.bf16.mxu0 %v5143_v44  ;;  %1534 = vmatprep.subr.bf16.mxu1 %v5146_v45 }
  0xa7   :  { %1371 = vmatpush1.bf16.msra.mxu0 %v5141_v46  ;;  %1535 = vmatpush1.bf16.msra.mxu1 %v5144_v47 }
  0xa8   :  { %1372 = vmatprep.subr.bf16.mxu0 %v5149_v48  ;;  %1536 = vmatprep.subr.bf16.mxu1 %v5152_v49 }
  0xab   :  { %1373 = vmatpush1.bf16.msra.mxu0 %v5147_v50  ;;  %1537 = vmatpush1.bf16.msra.mxu1 %v5150_v51 }
  0xac   :  { %1374 = vmatprep.subr.bf16.mxu0 %v5155_v52  ;;  %1538 = vmatprep.subr.bf16.mxu1 %v5158_v53 }
  0xaf   :  { %1375 = vmatpush1.bf16.msra.mxu0 %v5153_v54  ;;  %1539 = vmatpush1.bf16.msra.mxu1 %v5156_v55 }
  0xb0   :  { %1376 = vmatprep.subr.bf16.mxu0 %v5161_v56  ;;  %1540 = vmatprep.subr.bf16.mxu1 %v5164_v57 }
  0xb3   :  { %1377 = vmatpush1.bf16.msra.mxu0 %v5159_v58  ;;  %1541 = vmatpush1.bf16.msra.mxu1 %v5162_v59 }
  0xb4   :  { %1378 = vmatprep.subr.bf16.mxu0 %v5167_v60  ;;  %1542 = vmatprep.subr.bf16.mxu1 %v5170_v61 }
  0xb7   :  { %1379 = vmatpush1.bf16.msra.mxu0 %v5165_v62  ;;  %1543 = vmatpush1.bf16.msra.mxu1 %v5168_v63 }
  0xb8   :  { %1380 = vmatprep.subr.bf16.mxu0 %v5173_v0  ;;  %1544 = vmatprep.subr.bf16.mxu1 %v5176_v1 }
  0xbb   :  { %1381 = vmatpush1.bf16.msra.mxu0 %v5171_v2  ;;  %1545 = vmatpush1.bf16.msra.mxu1 %v5174_v3 }
  0xbc   :  { %1382 = vmatprep.subr.bf16.mxu0 %v5179_v4  ;;  %1546 = vmatprep.subr.bf16.mxu1 %v5182_v5 }
  0xbf   :  { %1383 = vmatpush1.bf16.msra.mxu0 %v5177_v6  ;;  %1547 = vmatpush1.bf16.msra.mxu1 %v5180_v7 }
  0xc0   :  { %1393 = vmatprep.subr.bf16.mxu0 %v5187_v8  ;;  %1557 = vmatprep.subr.bf16.mxu1 %v5190_v9 }
  0xc2   :  { %1385 = vmatmul.mubr.bf16.vlgmr.msra.gmra.mrb[0].mxu0 %v4263_v13  ;;  %1549 = vmatmul.mubr.bf16.vlgmr.msra.gmra.mrb[0].mxu1 %v4263_v13 }
  0xc3   :  { %1394 = vmatpush1.bf16.msra.mxu0 %v5185_v10  ;;  %1558 = vmatpush1.bf16.msra.mxu1 %v5188_v12 }
  0xc4   :  { %1425 = vmatprep.mubr.bf16.mxu0 %v5720_v15  ;;  %1589 = vmatprep.mubr.bf16.mxu1 %v5720_v15 }
  0xc5   :  { %2002 = vmatprep.subr.bf16.mxu0 %v5194_v14 }
  0xce   :  { %4462 = vmatmul.mubr.msk.bf16.vlgmr.msra.gmra.mrb[0].mxu0 %vm1266_vm0, %v5191_v11  ;;  %4463 = vmatmul.mubr.msk.bf16.vlgmr.msra.gmra.mrb[0].mxu1 %vm1266_vm0, %v5191_v11 }
  0xcf   :  { %2003 = vmatpush1.bf16.msra.mxu0 %v5192_v16  ;;  %2340 = vmatprep.mubr.bf16.mxu1 %v5720_v15 }
  0xd0   :  { %2004 = vmatprep.subr.bf16.mxu0 %v5197_v17 }
  0xd3   :  { %2005 = vmatpush1.bf16.msra.mxu0 %v5195_v18 }
  0xd4   :  { %2006 = vmatprep.subr.bf16.mxu0 %v5200_v19 }
  0xd7   :  { %2007 = vmatpush1.bf16.msra.mxu0 %v5198_v20 }
  0xd8   :  { %2008 = vmatprep.subr.bf16.mxu0 %v5203_v21 }
  0xdb   :  { %2009 = vmatpush1.bf16.msra.mxu0 %v5201_v22 }
  0xdc   :  { %2010 = vmatprep.subr.bf16.mxu0 %v5206_v23 }
  0xdf   :  { %2011 = vmatpush1.bf16.msra.mxu0 %v5204_v24 }
  0xe0   :  { %2012 = vmatprep.subr.bf16.mxu0 %v5209_v25 }
  0xe3   :  { %2013 = vmatpush1.bf16.msra.mxu0 %v5207_v26 }
  0xe4   :  { %2014 = vmatprep.subr.bf16.mxu0 %v5212_v27 }
  0xe7   :  { %2015 = vmatpush1.bf16.msra.mxu0 %v5210_v28 }
  0xe8   :  { %2016 = vmatprep.subr.bf16.mxu0 %v5215_v29 }
  0xeb   :  { %2017 = vmatpush1.bf16.msra.mxu0 %v5213_v30 }
  0xec   :  { %2018 = vmatprep.subr.bf16.mxu0 %v5218_v31 }
  0xef   :  { %2019 = vmatpush1.bf16.msra.mxu0 %v5216_v32 }
  0xf0   :  { %2020 = vmatprep.subr.bf16.mxu0 %v5221_v33 }
  0xf3   :  { %2021 = vmatpush1.bf16.msra.mxu0 %v5219_v34 }
  0xf4   :  { %2022 = vmatprep.subr.bf16.mxu0 %v5224_v35 }
  0xf7   :  { %2023 = vmatpush1.bf16.msra.mxu0 %v5222_v36 }
  0xf8   :  { %2024 = vmatprep.subr.bf16.mxu0 %v5227_v37 }
  0xfb   :  { %2025 = vmatpush1.bf16.msra.mxu0 %v5225_v38 }
  0xfc   :  { %2026 = vmatprep.subr.bf16.mxu0 %v5230_v39 }
  0xff   :  { %2027 = vmatpush1.bf16.msra.mxu0 %v5228_v40 }
 0x100   :  { %2028 = vmatprep.subr.bf16.mxu0 %v5233_v41 }
 0x101   :  { %18 = vsyncpa [#allocation5], 0  ;;  %v5236_v43 = vld [vmem:[%s7484_s4 + $0xe4] ss:$8 sps:$4 sm:$0xff]   ;;  %v5234_v44 = vld [vmem:[%s7484_s4 + $0xe0] ss:$8 sps:$4 sm:$0xff]   ;;  %v242_v52 = vlaneseq }
 0x102   :  { %v5239_v45 = vld [vmem:[%s7484_s4 + $0xf4] ss:$8 sps:$4 sm:$0xff]   ;;  %v5237_v46 = vld [vmem:[%s7484_s4 + $0xf0] ss:$8 sps:$4 sm:$0xff]   ;;  %v5242_v47 = vld [vmem:[%s7484_s4 + $0x104] ss:$8 sps:$4 sm:$0xff]  }
 0x103   :  { %2029 = vmatpush1.bf16.msra.mxu0 %v5231_v42  ;;  %v5288_v48 = vld [vmem:[%s7486_s6] ss:$16 sps:$4 sm:$0xff]   ;;  %v5290_v49 = vld [vmem:[%s7486_s6 + $0x4] ss:$16 sps:$4 sm:$0xff]   ;;  %v6509_v53 = vshrl.u32 %v242_v52, 7 }
 0x104   :  { %2030 = vmatprep.subr.bf16.mxu0 %v5236_v43  ;;  %v5293_v50 = vld [vmem:[%s7486_s6 + $0x24] ss:$16 sps:$4 sm:$0xff]   ;;  %2308 = vmatprep.subr.bf16.mxu1 %v5290_v49  ;;  %v5291_v51 = vld [vmem:[%s7486_s6 + $0x20] ss:$16 sps:$4 sm:$0xff]  }
 0x105   :  { %2309 = vmatpush1.bf16.msra.mxu1 %v5288_v48  ;;  %v6512_v54 = vsub.s32 0, %v6509_v53  ;;  %v6517_v55 = vld [vmem:[%s7483_s3] sm:$0xf]  ;;  %v6520_v56 = vsub.s32 1, %v6509_v53  ;;  %v6523_v57 = vsub.s32 3, %v6509_v53  ;;  %v6609_v40 = vsub.s32 2, %v6509_v53 }
 0x106   :  { %2310 = vmatprep.subr.bf16.mxu1 %v5293_v50  ;;  %v5240_v13 = vld [vmem:[%s7484_s4 + $0x100] ss:$8 sps:$4 sm:$0xff]   ;;  %v5245_v11 = vld [vmem:[%s7484_s4 + $0x114] ss:$8 sps:$4 sm:$0xff]   ;;  %v5243_v17 = vld [vmem:[%s7484_s4 + $0x110] ss:$8 sps:$4 sm:$0xff]  }
 0x107   :  { %2031 = vmatpush1.bf16.msra.mxu0 %v5234_v44  ;;  %v245_v58 = vrot.slane %v6517_v55, %v6512_v54  ;;  %v249_v59 = vrot.slane %v6517_v55, %v6520_v56  ;;  %v257_v60 = vrot.slane %v6517_v55, %v6523_v57  ;;  %v5248_v18 = vld [vmem:[%s7484_s4 + $0x124] ss:$8 sps:$4 sm:$0xff]   ;;  %v5246_v19 = vld [vmem:[%s7484_s4 + $0x120] ss:$8 sps:$4 sm:$0xff]   ;;  %v5251_v20 = vld [vmem:[%s7484_s4 + $0x134] ss:$8 sps:$4 sm:$0xff]   ;;  %v253_v43 = vrot.slane %v6517_v55, %v6609_v40 }
 0x108   :  { %2032 = vmatprep.subr.bf16.mxu0 %v5239_v45  ;;  %v5249_v21 = vld [vmem:[%s7484_s4 + $0x130] ss:$8 sps:$4 sm:$0xff]   ;;  %v5254_v22 = vld [vmem:[%s7484_s4 + $0x144] ss:$8 sps:$4 sm:$0xff]   ;;  %v5252_v23 = vld [vmem:[%s7484_s4 + $0x140] ss:$8 sps:$4 sm:$0xff]  }
 0x109   :  { %2311 = vmatpush1.bf16.msra.mxu1 %v5291_v51  ;;  %v5257_v24 = vld [vmem:[%s7484_s4 + $0x154] ss:$8 sps:$4 sm:$0xff]   ;;  %v5255_v25 = vld [vmem:[%s7484_s4 + $0x150] ss:$8 sps:$4 sm:$0xff]   ;;  %v5260_v26 = vld [vmem:[%s7484_s4 + $0x164] ss:$8 sps:$4 sm:$0xff]  }
 0x10a   :  { %v5258_v27 = vld [vmem:[%s7484_s4 + $0x160] ss:$8 sps:$4 sm:$0xff]   ;;  %v5263_v28 = vld [vmem:[%s7484_s4 + $0x174] ss:$8 sps:$4 sm:$0xff]   ;;  %v5261_v29 = vld [vmem:[%s7484_s4 + $0x170] ss:$8 sps:$4 sm:$0xff]  }
 0x10b   :  { %2033 = vmatpush1.bf16.msra.mxu0 %v5237_v46  ;;  %v5266_v30 = vld [vmem:[%s7484_s4 + $0x184] ss:$8 sps:$4 sm:$0xff]   ;;  %v5264_v31 = vld [vmem:[%s7484_s4 + $0x180] ss:$8 sps:$4 sm:$0xff]   ;;  %v5269_v32 = vld [vmem:[%s7484_s4 + $0x194] ss:$8 sps:$4 sm:$0xff]  }
 0x10c   :  { %2043 = vmatprep.subr.bf16.mxu0 %v5242_v47  ;;  %v5267_v33 = vld [vmem:[%s7484_s4 + $0x190] ss:$8 sps:$4 sm:$0xff]   ;;  %v5272_v34 = vld [vmem:[%s7484_s4 + $0x1a4] ss:$8 sps:$4 sm:$0xff]   ;;  %v5270_v35 = vld [vmem:[%s7484_s4 + $0x1a0] ss:$8 sps:$4 sm:$0xff]  }
 0x10d   :  { %v5275_v36 = vld [vmem:[%s7484_s4 + $0x1b4] ss:$8 sps:$4 sm:$0xff]   ;;  %v5273_v37 = vld [vmem:[%s7484_s4 + $0x1b0] ss:$8 sps:$4 sm:$0xff]   ;;  %v5278_v38 = vld [vmem:[%s7484_s4 + $0x1c4] ss:$8 sps:$4 sm:$0xff]  }
 0x10e   :  { %v5276_v39 = vld [vmem:[%s7484_s4 + $0x1c0] ss:$8 sps:$4 sm:$0xff]   ;;  %v5281_v41 = vld [vmem:[%s7484_s4 + $0x1d4] ss:$8 sps:$4 sm:$0xff]   ;;  %v5279_v42 = vld [vmem:[%s7484_s4 + $0x1d0] ss:$8 sps:$4 sm:$0xff]  }
 0x10f   :  { %v5284_v44 = vld [vmem:[%s7484_s4 + $0x1e4] ss:$8 sps:$4 sm:$0xff]   ;;  %v5282_v45 = vld [vmem:[%s7484_s4 + $0x1e0] ss:$8 sps:$4 sm:$0xff]   ;;  %v5287_v47 = vld [vmem:[%s7484_s4 + $0x1f4] ss:$8 sps:$4 sm:$0xff]  }
 0x110   :  { %v5285_v48 = vld [vmem:[%s7484_s4 + $0x1f0] ss:$8 sps:$4 sm:$0xff]   ;;  %v5296_v51 = vld [vmem:[%s7486_s6 + $0x44] ss:$16 sps:$4 sm:$0xff]  }
 0x111   :  { %v5294_v52 = vld [vmem:[%s7486_s6 + $0x40] ss:$16 sps:$4 sm:$0xff]   ;;  %2312 = vmatprep.subr.bf16.mxu1 %v5296_v51  ;;  %v5299_v55 = vld [vmem:[%s7486_s6 + $0x64] ss:$16 sps:$4 sm:$0xff]  }
 0x112   :  { %2313 = vmatpush1.bf16.msra.mxu1 %v5294_v52  ;;  %v5317_v52 = vld [vmem:[%s7486_s6 + $0x2c] ss:$16 sps:$4 sm:$0xff]  }
 0x113   :  { %2314 = vmatprep.subr.bf16.mxu1 %v5299_v55  ;;  %v5315_v55 = vld [vmem:[%s7486_s6 + $0x28] ss:$16 sps:$4 sm:$0xff]  }
 0x1a1   :  { %v1427_v61 = vpop.f32.mrb[0].mxu0  ;;  %v6531_v62 = vpop.f32.mrb[0].mxu1 }
 0x1a2   :  { %v4836_v63 = vadd.f32 %v1427_v61, %v245_v58  ;;  %v1429_v0 = vpop.f32.mrb[1].mxu0  ;;  %v1593_v1 = vpop.f32.mrb[1].mxu1  ;;  %v4838_v46 = vadd.f32 %v6531_v62, %v253_v43  ;;  %v5297_v58 = vld [vmem:[%s7486_s6 + $0x60] ss:$16 sps:$4 sm:$0xff]   ;;  %v5305_v61 = vld [vmem:[%s7486_s6 + $0xa4] ss:$16 sps:$4 sm:$0xff]  }
 0x1a3   :  { %v4837_v2 = vadd.f32 %v1429_v0, %v249_v59  ;;  %v4839_v3 = vadd.f32 %v1593_v1, %v257_v60  ;;  %v1431_v4 = vpop.f32.mrb[2].mxu0  ;;  %v1595_v5 = vpop.f32.mrb[2].mxu1  ;;  %2315 = vmatpush1.bf16.msra.mxu1 %v5297_v58  ;;  %v5302_v59 = vld [vmem:[%s7486_s6 + $0x84] ss:$16 sps:$4 sm:$0xff]   ;;  %v5300_v60 = vld [vmem:[%s7486_s6 + $0x80] ss:$16 sps:$4 sm:$0xff]  }
 0x1a4   :  { %v1598_v6 = vmax.f32 %v4836_v63, 0.0  ;;  %v1432_v7 = vpop.f32.mrb[3].mxu0  ;;  %v1596_v8 = vpop.f32.mrb[3].mxu1  ;;  %v1600_v49 = vmax.f32 %v4838_v46, 0.0  ;;  %2316 = vmatprep.subr.bf16.mxu1 %v5302_v59  ;;  %v5303_v62 = vld [vmem:[%s7486_s6 + $0xa0] ss:$16 sps:$4 sm:$0xff]  }
 0x1a5   :  { %v1599_v9 = vmax.f32 %v4837_v2, 0.0  ;;  %v1601_v10 = vmax.f32 %v4839_v3, 0.0  ;;  %v5308_v63 = vld [vmem:[%s7486_s6 + $0xc4] ss:$16 sps:$4 sm:$0xff]   ;;  %v5306_v0 = vld [vmem:[%s7486_s6 + $0xc0] ss:$16 sps:$4 sm:$0xff]  }
 0x1a6   :  { %v1602_v14 = vpack.c.bf16 %v1598_v6, %v1598_v6  ;;  %v1604_v50 = vpack.c.bf16 %v1600_v49, %v1600_v49  ;;  %v5311_v1 = vld [vmem:[%s7486_s6 + $0xe4] ss:$16 sps:$4 sm:$0xff]   ;;  %v5309_v2 = vld [vmem:[%s7486_s6 + $0xe0] ss:$16 sps:$4 sm:$0xff]   ;;  %v5314_v3 = vld [vmem:[%s7486_s6 + $0xc] ss:$16 sps:$4 sm:$0xff]  }
 0x1a7   :  { %v1603_v12 = vpack.c.bf16 %v1599_v9, %v1599_v9  ;;  %v1605_v16 = vpack.c.bf16 %v1601_v10, %v1601_v10  ;;  %2317 = vmatpush1.bf16.msra.mxu1 %v5300_v60  ;;  %v5339_v4 = vld [vmem:[%s7488_s8 + $0x8] ss:$28 sps:$4 sm:$0xff]   ;;  %v5345_v7 = vld [vmem:[%s7488_s8 + $0x40] ss:$28 sps:$4 sm:$0xff]   ;;  %v5351_v9 = vld [vmem:[%s7488_s8 + $0x78] ss:$28 sps:$4 sm:$0xff]  }
 0x1a8   :  { %2318 = vmatprep.subr.bf16.mxu1 %v5305_v61  ;;  %v5341_v5 = vld [vmem:[%s7488_s8 + $0xc] ss:$28 sps:$4 sm:$0xff]   ;;  %v5347_v6 = vld [vmem:[%s7488_s8 + $0x44] ss:$28 sps:$4 sm:$0xff]   ;;  %v5353_v8 = vld [vmem:[%s7488_s8 + $0x7c] ss:$28 sps:$4 sm:$0xff]  }
 0x1a9   :  { %2034 = vmatprep.mubr.bf16.mxu0 %v1603_v12  ;;  %v5359_v10 = vld [vmem:[%s7488_s8 + $0xb4] ss:$28 sps:$4 sm:$0xff]   ;;  %v5320_v58 = vld [vmem:[%s7486_s6 + $0x4c] ss:$16 sps:$4 sm:$0xff]   ;;  %v5318_v59 = vld [vmem:[%s7486_s6 + $0x48] ss:$16 sps:$4 sm:$0xff]  }
 0x1aa   :  { %2035 = vmatmul.mubr.bf16.vlgmr.msra.gmra.mrb[4].mxu0 %v1602_v14  ;;  %v5357_v12 = vld [vmem:[%s7488_s8 + $0xb0] ss:$28 sps:$4 sm:$0xff]   ;;  %v5363_v14 = vld [vmem:[%s7488_s8 + $0xe8] ss:$28 sps:$4 sm:$0xff]  }
 0x1ab   :  { %2044 = vmatpush1.bf16.msra.mxu0 %v5240_v13  ;;  %2075 = vmatprep.mubr.bf16.mxu0 %v1605_v16  ;;  %v5365_v13 = vld [vmem:[%s7488_s8 + $0xec] ss:$28 sps:$4 sm:$0xff]   ;;  %v5369_v16 = vld [vmem:[%s7488_s8 + $0x120] ss:$28 sps:$4 sm:$0xff]  }
 0x1ac   :  { %2045 = vmatprep.subr.bf16.mxu0 %v5245_v11  ;;  %2319 = vmatpush1.bf16.msra.mxu1 %v5303_v62  ;;  %v5371_v11 = vld [vmem:[%s7488_s8 + $0x124] ss:$28 sps:$4 sm:$0xff]   ;;  %v5323_v60 = vld [vmem:[%s7486_s6 + $0x6c] ss:$16 sps:$4 sm:$0xff]   ;;  %v5324_v62 = vld [vmem:[%s7486_s6 + $0x88] ss:$16 sps:$4 sm:$0xff]  }
 0x1ad   :  { %2320 = vmatprep.subr.bf16.mxu1 %v5308_v63  ;;  %v5326_v61 = vld [vmem:[%s7486_s6 + $0x8c] ss:$16 sps:$4 sm:$0xff]  }
 0x1ae   :  { %v5329_v63 = vld [vmem:[%s7486_s6 + $0xac] ss:$16 sps:$4 sm:$0xff]  }
 0x1af   :  { %2046 = vmatpush1.bf16.msra.mxu0 %v5243_v17  ;;  %v5377_v17 = vld [vmem:[%s7488_s8 + $0x15c] ss:$28 sps:$4 sm:$0xff]  }
 0x1b0   :  { %2047 = vmatprep.subr.bf16.mxu0 %v5248_v18  ;;  %2321 = vmatpush1.bf16.msra.mxu1 %v5306_v0  ;;  %v5375_v18 = vld [vmem:[%s7488_s8 + $0x158] ss:$28 sps:$4 sm:$0xff]  }
 0x1b1   :  { %2322 = vmatprep.subr.bf16.mxu1 %v5311_v1  ;;  %v5327_v0 = vld [vmem:[%s7486_s6 + $0xa8] ss:$16 sps:$4 sm:$0xff]   ;;  %v5332_v1 = vld [vmem:[%s7486_s6 + $0xcc] ss:$16 sps:$4 sm:$0xff]  }
 0x1b3   :  { %2048 = vmatpush1.bf16.msra.mxu0 %v5246_v19  ;;  %v5383_v19 = vld [vmem:[%s7488_s8 + $0x194] ss:$28 sps:$4 sm:$0xff]  }
 0x1b4   :  { %2049 = vmatprep.subr.bf16.mxu0 %v5251_v20  ;;  %2323 = vmatpush1.bf16.msra.mxu1 %v5309_v2  ;;  %v5381_v20 = vld [vmem:[%s7488_s8 + $0x190] ss:$28 sps:$4 sm:$0xff]   ;;  %v5330_v2 = vld [vmem:[%s7486_s6 + $0xc8] ss:$16 sps:$4 sm:$0xff]  }
 0x1b5   :  { %2349 = vmatprep.subr.bf16.mxu1 %v5314_v3  ;;  %v5335_v3 = vld [vmem:[%s7486_s6 + $0xec] ss:$16 sps:$4 sm:$0xff]  }
 0x1b7   :  { %2050 = vmatpush1.bf16.msra.mxu0 %v5249_v21  ;;  %v5389_v21 = vld [vmem:[%s7488_s8 + $0x1cc] ss:$28 sps:$4 sm:$0xff]  }
 0x1b8   :  { %2051 = vmatprep.subr.bf16.mxu0 %v5254_v22  ;;  %v5387_v22 = vld [vmem:[%s7488_s8 + $0x1c8] ss:$28 sps:$4 sm:$0xff]  }
 0x1bb   :  { %2052 = vmatpush1.bf16.msra.mxu0 %v5252_v23  ;;  %v5395_v23 = vld [vmem:[%s7488_s8 + $0x204] ss:$28 sps:$4 sm:$0xff]  }
 0x1bc   :  { %2053 = vmatprep.subr.bf16.mxu0 %v5257_v24  ;;  %v5393_v24 = vld [vmem:[%s7488_s8 + $0x200] ss:$28 sps:$4 sm:$0xff]  }
 0x1bf   :  { %2054 = vmatpush1.bf16.msra.mxu0 %v5255_v25  ;;  %v5401_v25 = vld [vmem:[%s7488_s8 + $0x23c] ss:$28 sps:$4 sm:$0xff]  }
 0x1c0   :  { %2055 = vmatprep.subr.bf16.mxu0 %v5260_v26  ;;  %v5399_v26 = vld [vmem:[%s7488_s8 + $0x238] ss:$28 sps:$4 sm:$0xff]  }
 0x1c3   :  { %2056 = vmatpush1.bf16.msra.mxu0 %v5258_v27  ;;  %v5407_v27 = vld [vmem:[%s7488_s8 + $0x274] ss:$28 sps:$4 sm:$0xff]  }
 0x1c4   :  { %2057 = vmatprep.subr.bf16.mxu0 %v5263_v28  ;;  %v5405_v28 = vld [vmem:[%s7488_s8 + $0x270] ss:$28 sps:$4 sm:$0xff]  }
 0x1c7   :  { %2058 = vmatpush1.bf16.msra.mxu0 %v5261_v29  ;;  %v5413_v29 = vld [vmem:[%s7488_s8 + $0x2ac] ss:$28 sps:$4 sm:$0xff]  }
 0x1c8   :  { %2059 = vmatprep.subr.bf16.mxu0 %v5266_v30  ;;  %v5411_v30 = vld [vmem:[%s7488_s8 + $0x2a8] ss:$28 sps:$4 sm:$0xff]  }
 0x1cb   :  { %2060 = vmatpush1.bf16.msra.mxu0 %v5264_v31  ;;  %v5419_v31 = vld [vmem:[%s7488_s8 + $0x2e4] ss:$28 sps:$4 sm:$0xff]  }
 0x1cc   :  { %2061 = vmatprep.subr.bf16.mxu0 %v5269_v32  ;;  %v5417_v32 = vld [vmem:[%s7488_s8 + $0x2e0] ss:$28 sps:$4 sm:$0xff]  }
 0x1cf   :  { %2062 = vmatpush1.bf16.msra.mxu0 %v5267_v33  ;;  %v1670_v33 = vld [vmem:[%s7485_s5] sm:$0x3] }
 0x1d0   :  { %2063 = vmatprep.subr.bf16.mxu0 %v5272_v34  ;;  %v1675_v34 = vrot.slane %v1670_v33, %v6512_v54 }
 0x1d3   :  { %2064 = vmatpush1.bf16.msra.mxu0 %v5270_v35  ;;  %v1679_v35 = vrot.slane %v1670_v33, %v6520_v56  ;;  %v5414_v33 = vld [vmem:[%s7488_s8 + $0x2d8] ss:$28 sps:$4 sm:$0xff]  }
 0x1d4   :  { %2065 = vmatprep.subr.bf16.mxu0 %v5275_v36 }
 0x1d7   :  { %2066 = vmatpush1.bf16.msra.mxu0 %v5273_v37 }
 0x1d8   :  { %2067 = vmatprep.subr.bf16.mxu0 %v5278_v38 }
 0x1db   :  { %2068 = vmatpush1.bf16.msra.mxu0 %v5276_v39 }
 0x1dc   :  { %2069 = vmatprep.subr.bf16.mxu0 %v5281_v41 }
 0x1df   :  { %2070 = vmatpush1.bf16.msra.mxu0 %v5279_v42 }
 0x1e0   :  { %2071 = vmatprep.subr.bf16.mxu0 %v5284_v44 }
 0x1e3   :  { %2072 = vmatpush1.bf16.msra.mxu0 %v5282_v45  ;;  %v2089_v45 = vld [vmem:[%s7481_s1] sm:$0xf] }
 0x1e4   :  { %2073 = vmatprep.subr.bf16.mxu0 %v5287_v47  ;;  %v2090_v46 = vunpack.c.l.bf16 %v2089_v45  ;;  %v6926_v45 = vld [vmem:[%s7487_s7] sm:$0xf] }
 0x1e7   :  { %2074 = vmatpush1.bf16.msra.mxu0 %v5285_v48 }
 0x1e8   :  { %3925 = vmatprep.subr.bf16.mxu0 %v5341_v5  ;;  %v5338_v5 = vld [vmem:[%s7488_s8 + $0x4] ss:$28 sps:$4 sm:$0xff]  }
 0x1ea   :  { %2076 = vmatmul.mubr.bf16.vlgmr.msra.gmra.mrb[4].mxu0 %v1604_v50  ;;  %v5312_v50 = vld [vmem:[%s7486_s6 + $0x8] ss:$16 sps:$4 sm:$0xff]  }
 0x1eb   :  { %3926 = vmatpush1.bf16.msra.mxu0 %v5339_v4  ;;  %v5333_v4 = vld [vmem:[%s7486_s6 + $0xe8] ss:$16 sps:$4 sm:$0xff]  }
 0x1ec   :  { %3927 = vmatprep.subr.bf16.mxu0 %v5347_v6  ;;  %v5336_v6 = vld [vmem:[%s7488_s8] ss:$28 sps:$4 sm:$0xff]  }
 0x1ef   :  { %3928 = vmatpush1.bf16.msra.mxu0 %v5345_v7  ;;  %v5344_v7 = vld [vmem:[%s7488_s8 + $0x3c] ss:$28 sps:$4 sm:$0xff]  }
 0x1f0   :  { %3929 = vmatprep.subr.bf16.mxu0 %v5353_v8  ;;  %v5342_v8 = vld [vmem:[%s7488_s8 + $0x38] ss:$28 sps:$4 sm:$0xff]  }
 0x1f3   :  { %3930 = vmatpush1.bf16.msra.mxu0 %v5351_v9  ;;  %v5350_v9 = vld [vmem:[%s7488_s8 + $0x74] ss:$28 sps:$4 sm:$0xff]  }
 0x1f4   :  { %3931 = vmatprep.subr.bf16.mxu0 %v5359_v10  ;;  %v5348_v10 = vld [vmem:[%s7488_s8 + $0x70] ss:$28 sps:$4 sm:$0xff]  }
 0x1f7   :  { %3932 = vmatpush1.bf16.msra.mxu0 %v5357_v12  ;;  %v5356_v12 = vld [vmem:[%s7488_s8 + $0xac] ss:$28 sps:$4 sm:$0xff]  }
 0x1f8   :  { %3933 = vmatprep.subr.bf16.mxu0 %v5365_v13  ;;  %v5354_v13 = vld [vmem:[%s7488_s8 + $0xa8] ss:$28 sps:$4 sm:$0xff]  }
 0x1fb   :  { %3934 = vmatpush1.bf16.msra.mxu0 %v5363_v14  ;;  %v5362_v14 = vld [vmem:[%s7488_s8 + $0xe4] ss:$28 sps:$4 sm:$0xff]  }
 0x1fc   :  { %3935 = vmatprep.subr.bf16.mxu0 %v5371_v11  ;;  %v5360_v11 = vld [vmem:[%s7488_s8 + $0xe0] ss:$28 sps:$4 sm:$0xff]  }
 0x1ff   :  { %3936 = vmatpush1.bf16.msra.mxu0 %v5369_v16  ;;  %v5368_v16 = vld [vmem:[%s7488_s8 + $0x11c] ss:$28 sps:$4 sm:$0xff]  }
 0x200   :  { %3937 = vmatprep.subr.bf16.mxu0 %v5377_v17  ;;  %v5366_v17 = vld [vmem:[%s7488_s8 + $0x118] ss:$28 sps:$4 sm:$0xff]  }
 0x203   :  { %3938 = vmatpush1.bf16.msra.mxu0 %v5375_v18  ;;  %v5374_v18 = vld [vmem:[%s7488_s8 + $0x154] ss:$28 sps:$4 sm:$0xff]  }
 0x204   :  { %3939 = vmatprep.subr.bf16.mxu0 %v5383_v19  ;;  %v5372_v19 = vld [vmem:[%s7488_s8 + $0x150] ss:$28 sps:$4 sm:$0xff]  }
 0x207   :  { %3940 = vmatpush1.bf16.msra.mxu0 %v5381_v20  ;;  %v5380_v20 = vld [vmem:[%s7488_s8 + $0x18c] ss:$28 sps:$4 sm:$0xff]  }
 0x208   :  { %3941 = vmatprep.subr.bf16.mxu0 %v5389_v21  ;;  %v5378_v21 = vld [vmem:[%s7488_s8 + $0x188] ss:$28 sps:$4 sm:$0xff]  }
 0x20b   :  { %3942 = vmatpush1.bf16.msra.mxu0 %v5387_v22  ;;  %v5386_v22 = vld [vmem:[%s7488_s8 + $0x1c4] ss:$28 sps:$4 sm:$0xff]  }
 0x20c   :  { %3943 = vmatprep.subr.bf16.mxu0 %v5395_v23  ;;  %v5384_v23 = vld [vmem:[%s7488_s8 + $0x1c0] ss:$28 sps:$4 sm:$0xff]  }
 0x20f   :  { %3944 = vmatpush1.bf16.msra.mxu0 %v5393_v24  ;;  %v5392_v24 = vld [vmem:[%s7488_s8 + $0x1fc] ss:$28 sps:$4 sm:$0xff]  }
 0x210   :  { %3945 = vmatprep.subr.bf16.mxu0 %v5401_v25  ;;  %v5390_v25 = vld [vmem:[%s7488_s8 + $0x1f8] ss:$28 sps:$4 sm:$0xff]  }
 0x213   :  { %3946 = vmatpush1.bf16.msra.mxu0 %v5399_v26  ;;  %v5398_v26 = vld [vmem:[%s7488_s8 + $0x234] ss:$28 sps:$4 sm:$0xff]  }
 0x214   :  { %3947 = vmatprep.subr.bf16.mxu0 %v5407_v27  ;;  %v5396_v27 = vld [vmem:[%s7488_s8 + $0x230] ss:$28 sps:$4 sm:$0xff]  }
 0x217   :  { %3948 = vmatpush1.bf16.msra.mxu0 %v5405_v28  ;;  %v5404_v28 = vld [vmem:[%s7488_s8 + $0x26c] ss:$28 sps:$4 sm:$0xff]  }
 0x218   :  { %3949 = vmatprep.subr.bf16.mxu0 %v5413_v29  ;;  %v5402_v29 = vld [vmem:[%s7488_s8 + $0x268] ss:$28 sps:$4 sm:$0xff]  }
 0x21b   :  { %3950 = vmatpush1.bf16.msra.mxu0 %v5411_v30  ;;  %v5410_v30 = vld [vmem:[%s7488_s8 + $0x2a4] ss:$28 sps:$4 sm:$0xff]  }
 0x21c   :  { %3951 = vmatprep.subr.bf16.mxu0 %v5419_v31  ;;  %v5408_v31 = vld [vmem:[%s7488_s8 + $0x2a0] ss:$28 sps:$4 sm:$0xff]  }
 0x21f   :  { %3952 = vmatpush1.bf16.msra.mxu0 %v5417_v32  ;;  %v5416_v32 = vld [vmem:[%s7488_s8 + $0x2dc] ss:$28 sps:$4 sm:$0xff]  }
 0x2bd   :  { %v2077_v36 = vpop.f32.mrb[4].mxu0 }
 0x2be   :  { %v4840_v37 = vadd.f32 %v2077_v36, %v1675_v34  ;;  %v2079_v38 = vpop.f32.mrb[5].mxu0  ;;  %v5422_v34 = vld [vmem:[%s7488_s8 + $0x314] ss:$28 sps:$4 sm:$0xff]  }
 0x2bf   :  { %v4841_v39 = vadd.f32 %v2079_v38, %v1679_v35  ;;  %v2081_v41 = vpop.f32.mrb[6].mxu0  ;;  %v5425_v35 = vld [vmem:[%s7488_s8 + $0x31c] ss:$28 sps:$4 sm:$0xff]   ;;  %v5428_v38 = vld [vmem:[%s7488_s8 + $0x34c] ss:$28 sps:$4 sm:$0xff]  }
 0x2c0   :  { %2084 = vst [vmem:[#allocation4] sm:$0xff] %v4840_v37  ;;  %v2082_v42 = vpop.f32.mrb[7].mxu0  ;;  %v5423_v36 = vld [vmem:[%s7488_s8 + $0x318] ss:$28 sps:$4 sm:$0xff]   ;;  %3953 = vmatprep.subr.bf16.mxu0 %v5425_v35  ;;  %v5429_v41 = vld [vmem:[%s7488_s8 + $0x350] ss:$28 sps:$4 sm:$0xff]  }
 0x2c1   :  { %2085 = vst [vmem:[#allocation4 + $0x8] sm:$0xff] %v4841_v39  ;;  %v2086_v43 = vmul.f32 0.5, %v4841_v39  ;;  %3954 = vmatpush1.bf16.msra.mxu0 %v5423_v36  ;;  %v5431_v39 = vld [vmem:[%s7488_s8 + $0x354] ss:$28 sps:$4 sm:$0xff]   ;;  %v5426_v42 = vld [vmem:[%s7488_s8 + $0x348] ss:$28 sps:$4 sm:$0xff]  }
 0x2c2   :  { %3955 = vmatprep.subr.bf16.mxu0 %v5431_v39  ;;  %v5485_v35 = vld [vmem:[%s7488_s8 + $0x54c] ss:$28 sps:$4 sm:$0xff]  }
 0x2c3   :  { %v2087_v44 = vmul.f32 1.442695, %v2086_v43  ;;  %v5434_v43 = vld [vmem:[%s7488_s8 + $0x384] ss:$28 sps:$4 sm:$0xff]  }
 0x2c4   :  { %v5483_v39 = vld [vmem:[%s7488_s8 + $0x548] ss:$28 sps:$4 sm:$0xff]  }
 0x2c5   :  { %5656 = vpow2.f32 %v2087_v44  ;;  %3956 = vmatpush1.bf16.msra.mxu0 %v5429_v41  ;;  %v5437_v44 = vld [vmem:[%s7488_s8 + $0x38c] ss:$28 sps:$4 sm:$0xff]   ;;  %v5488_v41 = vld [vmem:[%s7488_s8 + $0x57c] ss:$28 sps:$4 sm:$0xff]  }
 0x2c6   :  { %3966 = vmatprep.subr.bf16.mxu0 %v5437_v44  ;;  %v5489_v44 = vld [vmem:[%s7488_s8 + $0x580] ss:$28 sps:$4 sm:$0xff]  }
 0x2cf   :  { %v5657_v47 = vpop.eup %5656 }
 0x2d0   :  { %v2091_v48 = vmul.f32 %v5657_v47, %v2090_v46  ;;  %v2131_v46 = vrot.slane %v6926_v45, %v6512_v54  ;;  %v2135_v47 = vrot.slane %v6926_v45, %v6520_v56 }
 0x2d2   :  { %v2092_v49 = vadd.f32 %v4840_v37, %v2091_v48  ;;  %v5420_v37 = vld [vmem:[%s7488_s8 + $0x310] ss:$28 sps:$4 sm:$0xff]  }
 0x2d4   :  { %v2093_v51 = vpack.c.bf16 %v2092_v49, %v2092_v49 }
 0x2d6   :  { %2341 = vmatmul.mubr.bf16.vlgmr.msra.gmra.mrb[4].mxu1 %v2093_v51 }
 0x2d7   :  { %2350 = vmatpush1.bf16.msra.mxu1 %v5312_v50  ;;  %2381 = vmatprep.mubr.bf16.mxu1 %v5720_v15  ;;  %v5321_v15 = vld [vmem:[%s7486_s6 + $0x68] ss:$16 sps:$4 sm:$0xff]  }
 0x2d8   :  { %2351 = vmatprep.subr.bf16.mxu1 %v5317_v52 }
 0x2db   :  { %2352 = vmatpush1.bf16.msra.mxu1 %v5315_v55 }
 0x2dc   :  { %2353 = vmatprep.subr.bf16.mxu1 %v5320_v58 }
 0x2df   :  { %2354 = vmatpush1.bf16.msra.mxu1 %v5318_v59 }
 0x2e0   :  { %2355 = vmatprep.subr.bf16.mxu1 %v5323_v60 }
 0x2e3   :  { %2356 = vmatpush1.bf16.msra.mxu1 %v5321_v15  ;;  %v5432_v15 = vld [vmem:[%s7488_s8 + $0x380] ss:$28 sps:$4 sm:$0xff]  }
 0x2e4   :  { %2357 = vmatprep.subr.bf16.mxu1 %v5326_v61  ;;  %v5435_v61 = vld [vmem:[%s7488_s8 + $0x388] ss:$28 sps:$4 sm:$0xff]  }
 0x2e7   :  { %2358 = vmatpush1.bf16.msra.mxu1 %v5324_v62 }
 0x2e8   :  { %2359 = vmatprep.subr.bf16.mxu1 %v5329_v63  ;;  %v5440_v63 = vld [vmem:[%s7488_s8 + $0x3bc] ss:$28 sps:$4 sm:$0xff]  }
 0x2eb   :  { %2360 = vmatpush1.bf16.msra.mxu1 %v5327_v0  ;;  %v5443_v0 = vld [vmem:[%s7488_s8 + $0x3c4] ss:$28 sps:$4 sm:$0xff]  }
 0x2ec   :  { %2361 = vmatprep.subr.bf16.mxu1 %v5332_v1  ;;  %v5438_v1 = vld [vmem:[%s7488_s8 + $0x3b8] ss:$28 sps:$4 sm:$0xff]  }
 0x2ef   :  { %2362 = vmatpush1.bf16.msra.mxu1 %v5330_v2  ;;  %v5441_v2 = vld [vmem:[%s7488_s8 + $0x3c0] ss:$28 sps:$4 sm:$0xff]  }
 0x2f0   :  { %2363 = vmatprep.subr.bf16.mxu1 %v5335_v3  ;;  %v5446_v3 = vld [vmem:[%s7488_s8 + $0x3f4] ss:$28 sps:$4 sm:$0xff]  }
 0x2f3   :  { %2364 = vmatpush1.bf16.msra.mxu1 %v5333_v4  ;;  %v5449_v4 = vld [vmem:[%s7488_s8 + $0x3fc] ss:$28 sps:$4 sm:$0xff]  }
 0x2f4   :  { %3843 = vmatprep.subr.bf16.mxu1 %v5338_v5  ;;  %v5444_v5 = vld [vmem:[%s7488_s8 + $0x3f0] ss:$28 sps:$4 sm:$0xff]  }
 0x2f6   :  { %2382 = vmatmul.mubr.bf16.vlgmr.msra.gmra.mrb[8].mxu1 %v2093_v51 }
 0x2f7   :  { %3844 = vmatpush1.bf16.msra.mxu1 %v5336_v6  ;;  %v5447_v6 = vld [vmem:[%s7488_s8 + $0x3f8] ss:$28 sps:$4 sm:$0xff]  }
 0x2f8   :  { %3845 = vmatprep.subr.bf16.mxu1 %v5344_v7  ;;  %v5452_v7 = vld [vmem:[%s7488_s8 + $0x42c] ss:$28 sps:$4 sm:$0xff]  }
 0x2fb   :  { %3846 = vmatpush1.bf16.msra.mxu1 %v5342_v8  ;;  %v5455_v8 = vld [vmem:[%s7488_s8 + $0x434] ss:$28 sps:$4 sm:$0xff]  }
 0x2fc   :  { %3847 = vmatprep.subr.bf16.mxu1 %v5350_v9  ;;  %v5450_v9 = vld [vmem:[%s7488_s8 + $0x428] ss:$28 sps:$4 sm:$0xff]  }
 0x2ff   :  { %3848 = vmatpush1.bf16.msra.mxu1 %v5348_v10  ;;  %v5453_v10 = vld [vmem:[%s7488_s8 + $0x430] ss:$28 sps:$4 sm:$0xff]  }
 0x300   :  { %3849 = vmatprep.subr.bf16.mxu1 %v5356_v12  ;;  %v5458_v12 = vld [vmem:[%s7488_s8 + $0x464] ss:$28 sps:$4 sm:$0xff]  }
 0x303   :  { %3850 = vmatpush1.bf16.msra.mxu1 %v5354_v13  ;;  %v5461_v13 = vld [vmem:[%s7488_s8 + $0x46c] ss:$28 sps:$4 sm:$0xff]  }
 0x304   :  { %3851 = vmatprep.subr.bf16.mxu1 %v5362_v14  ;;  %v5456_v14 = vld [vmem:[%s7488_s8 + $0x460] ss:$28 sps:$4 sm:$0xff]  }
 0x307   :  { %3852 = vmatpush1.bf16.msra.mxu1 %v5360_v11  ;;  %v5459_v11 = vld [vmem:[%s7488_s8 + $0x468] ss:$28 sps:$4 sm:$0xff]  }
 0x308   :  { %3853 = vmatprep.subr.bf16.mxu1 %v5368_v16  ;;  %v5464_v16 = vld [vmem:[%s7488_s8 + $0x49c] ss:$28 sps:$4 sm:$0xff]  }
 0x30b   :  { %3854 = vmatpush1.bf16.msra.mxu1 %v5366_v17  ;;  %v5467_v17 = vld [vmem:[%s7488_s8 + $0x4a4] ss:$28 sps:$4 sm:$0xff]  }
 0x30c   :  { %3855 = vmatprep.subr.bf16.mxu1 %v5374_v18  ;;  %v5462_v18 = vld [vmem:[%s7488_s8 + $0x498] ss:$28 sps:$4 sm:$0xff]  }
 0x30f   :  { %3856 = vmatpush1.bf16.msra.mxu1 %v5372_v19  ;;  %v5465_v19 = vld [vmem:[%s7488_s8 + $0x4a0] ss:$28 sps:$4 sm:$0xff]  }
 0x310   :  { %3857 = vmatprep.subr.bf16.mxu1 %v5380_v20  ;;  %v5470_v20 = vld [vmem:[%s7488_s8 + $0x4d4] ss:$28 sps:$4 sm:$0xff]  }
 0x313   :  { %3858 = vmatpush1.bf16.msra.mxu1 %v5378_v21  ;;  %v5473_v21 = vld [vmem:[%s7488_s8 + $0x4dc] ss:$28 sps:$4 sm:$0xff]  }
 0x314   :  { %3859 = vmatprep.subr.bf16.mxu1 %v5386_v22  ;;  %v2143_v22 = vrot.slane %v6926_v45, %v6523_v57 }
 0x317   :  { %3860 = vmatpush1.bf16.msra.mxu1 %v5384_v23  ;;  %v5468_v23 = vld [vmem:[%s7488_s8 + $0x4d0] ss:$28 sps:$4 sm:$0xff]  }
 0x318   :  { %3861 = vmatprep.subr.bf16.mxu1 %v5392_v24  ;;  %v5471_v24 = vld [vmem:[%s7488_s8 + $0x4d8] ss:$28 sps:$4 sm:$0xff]  }
 0x31b   :  { %3862 = vmatpush1.bf16.msra.mxu1 %v5390_v25  ;;  %v5476_v25 = vld [vmem:[%s7488_s8 + $0x50c] ss:$28 sps:$4 sm:$0xff]  }
 0x31c   :  { %3863 = vmatprep.subr.bf16.mxu1 %v5398_v26  ;;  %v5479_v26 = vld [vmem:[%s7488_s8 + $0x514] ss:$28 sps:$4 sm:$0xff]  }
 0x31f   :  { %3864 = vmatpush1.bf16.msra.mxu1 %v5396_v27 }
 0x320   :  { %3865 = vmatprep.subr.bf16.mxu1 %v5404_v28 }
 0x323   :  { %3866 = vmatpush1.bf16.msra.mxu1 %v5402_v29 }
 0x324   :  { %3867 = vmatprep.subr.bf16.mxu1 %v5410_v30 }
 0x327   :  { %3868 = vmatpush1.bf16.msra.mxu1 %v5408_v31  ;;  %v5474_v31 = vld [vmem:[%s7488_s8 + $0x508] ss:$28 sps:$4 sm:$0xff]  }
 0x328   :  { %3869 = vmatprep.subr.bf16.mxu1 %v5416_v32  ;;  %v5477_v32 = vld [vmem:[%s7488_s8 + $0x510] ss:$28 sps:$4 sm:$0xff]  }
 0x32b   :  { %3870 = vmatpush1.bf16.msra.mxu1 %v5414_v33 }
 0x32c   :  { %3871 = vmatprep.subr.bf16.mxu1 %v5422_v34  ;;  %v5482_v34 = vld [vmem:[%s7488_s8 + $0x544] ss:$28 sps:$4 sm:$0xff]  }
 0x32f   :  { %3872 = vmatpush1.bf16.msra.mxu1 %v5420_v37 }
 0x330   :  { %3873 = vmatprep.subr.bf16.mxu1 %v5428_v38  ;;  %v5480_v38 = vld [vmem:[%s7488_s8 + $0x540] ss:$28 sps:$4 sm:$0xff]  }
 0x333   :  { %3874 = vmatpush1.bf16.msra.mxu1 %v5426_v42  ;;  %v5491_v42 = vld [vmem:[%s7488_s8 + $0x584] ss:$28 sps:$4 sm:$0xff]  }
 0x334   :  { %3884 = vmatprep.subr.bf16.mxu1 %v5434_v43  ;;  %v5486_v43 = vld [vmem:[%s7488_s8 + $0x578] ss:$28 sps:$4 sm:$0xff]  }
 0x3a9   :  { %v2342_v48 = vpop.f32.mrb[4].mxu1 }
 0x3aa   :  { %v2343_v49 = vadd.f32 %v2342_v48, %v2131_v46  ;;  %v2344_v50 = vpop.f32.mrb[5].mxu1  ;;  %v5494_v46 = vld [vmem:[%s7488_s8 + $0x5b4] ss:$28 sps:$4 sm:$0xff]  }
 0x3ab   :  { %v2345_v51 = vadd.f32 %v2344_v50, %v2135_v47  ;;  %v2346_v52 = vpop.f32.mrb[6].mxu1  ;;  %v5497_v47 = vld [vmem:[%s7488_s8 + $0x5bc] ss:$28 sps:$4 sm:$0xff]   ;;  %v5492_v48 = vld [vmem:[%s7488_s8 + $0x5b0] ss:$28 sps:$4 sm:$0xff]  }
 0x3ac   :  { %v2390_v55 = vmax.f32 %v2343_v49, 0.0  ;;  %v2347_v58 = vpop.f32.mrb[7].mxu1  ;;  %v5495_v49 = vld [vmem:[%s7488_s8 + $0x5b8] ss:$28 sps:$4 sm:$0xff]   ;;  %v5500_v50 = vld [vmem:[%s7488_s8 + $0x5ec] ss:$28 sps:$4 sm:$0xff]  }
 0x3ad   :  { %v2391_v59 = vmax.f32 %v2345_v51, 0.0  ;;  %v5503_v51 = vld [vmem:[%s7488_s8 + $0x5f4] ss:$28 sps:$4 sm:$0xff]   ;;  %v5498_v52 = vld [vmem:[%s7488_s8 + $0x5e8] ss:$28 sps:$4 sm:$0xff]  }
 0x3ae   :  { %v6940_v62 = vpack.c.bf16 %v2390_v55, %v2390_v55  ;;  %v5501_v55 = vld [vmem:[%s7488_s8 + $0x5f0] ss:$28 sps:$4 sm:$0xff]   ;;  %v5506_v58 = vld [vmem:[%s7488_s8 + $0x624] ss:$28 sps:$4 sm:$0xff]  }
 0x3af   :  { %v6932_v60 = vpack.c.bf16 %v2391_v59, %v2391_v59  ;;  %v5509_v59 = vld [vmem:[%s7488_s8 + $0x62c] ss:$28 sps:$4 sm:$0xff]  }
 0x3b1   :  { %3875 = vmatprep.mubr.bf16.mxu1 %v6932_v60  ;;  %3957 = vmatprep.mubr.bf16.mxu0 %v6932_v60 }
 0x3b2   :  { %3876 = vmatmul.mubr.bf16.vlgmr.msra.gmra.mrb[12].mxu1 %v6940_v62  ;;  %3958 = vmatmul.mubr.bf16.vlgmr.msra.gmra.mrb[8].mxu0 %v6940_v62 }
 0x3b3   :  { %3885 = vmatpush1.bf16.msra.mxu1 %v5432_v15  ;;  %3967 = vmatpush1.bf16.msra.mxu0 %v5435_v61  ;;  %v5504_v15 = vld [vmem:[%s7488_s8 + $0x620] ss:$28 sps:$4 sm:$0xff]   ;;  %v5507_v61 = vld [vmem:[%s7488_s8 + $0x628] ss:$28 sps:$4 sm:$0xff]  }
 0x3b4   :  { %3886 = vmatprep.subr.bf16.mxu1 %v5440_v63  ;;  %3968 = vmatprep.subr.bf16.mxu0 %v5443_v0  ;;  %v5512_v63 = vld [vmem:[%s7488_s8 + $0x65c] ss:$28 sps:$4 sm:$0xff]   ;;  %v5515_v0 = vld [vmem:[%s7488_s8 + $0x664] ss:$28 sps:$4 sm:$0xff]  }
 0x3b7   :  { %3887 = vmatpush1.bf16.msra.mxu1 %v5438_v1  ;;  %3969 = vmatpush1.bf16.msra.mxu0 %v5441_v2  ;;  %v5510_v1 = vld [vmem:[%s7488_s8 + $0x658] ss:$28 sps:$4 sm:$0xff]   ;;  %v5513_v2 = vld [vmem:[%s7488_s8 + $0x660] ss:$28 sps:$4 sm:$0xff]  }
 0x3b8   :  { %3888 = vmatprep.subr.bf16.mxu1 %v5446_v3  ;;  %3970 = vmatprep.subr.bf16.mxu0 %v5449_v4  ;;  %v2139_v3 = vrot.slane %v6926_v45, %v6609_v40  ;;  %v5518_v4 = vld [vmem:[%s7488_s8 + $0x694] ss:$28 sps:$4 sm:$0xff]  }
 0x3b9   :  { %v5519_v45 = vld [vmem:[%s7488_s8 + $0x698] ss:$28 sps:$4 sm:$0xff]  }
 0x3bb   :  { %3889 = vmatpush1.bf16.msra.mxu1 %v5444_v5  ;;  %3971 = vmatpush1.bf16.msra.mxu0 %v5447_v6  ;;  %v5521_v5 = vld [vmem:[%s7488_s8 + $0x69c] ss:$28 sps:$4 sm:$0xff]   ;;  %v5516_v6 = vld [vmem:[%s7488_s8 + $0x690] ss:$28 sps:$4 sm:$0xff]  }
 0x3bc   :  { %3890 = vmatprep.subr.bf16.mxu1 %v5452_v7  ;;  %3972 = vmatprep.subr.bf16.mxu0 %v5455_v8  ;;  %v5524_v8 = vld [vmem:[%s7488_s8 + $0x6cc] ss:$28 sps:$4 sm:$0xff]  }
 0x3bf   :  { %3891 = vmatpush1.bf16.msra.mxu1 %v5450_v9  ;;  %3973 = vmatpush1.bf16.msra.mxu0 %v5453_v10  ;;  %v5527_v9 = vld [vmem:[%s7488_s8 + $0x6d4] ss:$28 sps:$4 sm:$0xff]   ;;  %v5522_v10 = vld [vmem:[%s7488_s8 + $0x6c8] ss:$28 sps:$4 sm:$0xff]  }
 0x3c0   :  { %3892 = vmatprep.subr.bf16.mxu1 %v5458_v12  ;;  %3974 = vmatprep.subr.bf16.mxu0 %v5461_v13  ;;  %v5525_v12 = vld [vmem:[%s7488_s8 + $0x6d0] ss:$28 sps:$4 sm:$0xff]  }
 0x3c3   :  { %3893 = vmatpush1.bf16.msra.mxu1 %v5456_v14  ;;  %3975 = vmatpush1.bf16.msra.mxu0 %v5459_v11  ;;  %v5530_v14 = vld [vmem:[%s7488_s8 + $0x14] ss:$28 sps:$4 sm:$0xff]  }
 0x3c4   :  { %3894 = vmatprep.subr.bf16.mxu1 %v5464_v16  ;;  %3976 = vmatprep.subr.bf16.mxu0 %v5467_v17  ;;  %v5531_v11 = vld [vmem:[%s7488_s8 + $0x1d8] ss:$28 sps:$4 sm:$0xff]   ;;  %v5528_v16 = vld [vmem:[%s7488_s8 + $0x10] ss:$28 sps:$4 sm:$0xff]  }
 0x3c7   :  { %3895 = vmatpush1.bf16.msra.mxu1 %v5462_v18  ;;  %3977 = vmatpush1.bf16.msra.mxu0 %v5465_v19  ;;  %v5532_v18 = vld [vmem:[%s7488_s8 + $0x18] ss:$28 sps:$4 sm:$0xff]   ;;  %v5535_v19 = vld [vmem:[%s7488_s8 + $0x4c] ss:$28 sps:$4 sm:$0xff]  }
 0x3c8   :  { %3896 = vmatprep.subr.bf16.mxu1 %v5470_v20  ;;  %3978 = vmatprep.subr.bf16.mxu0 %v5473_v21  ;;  %v5536_v20 = vld [vmem:[%s7488_s8 + $0x210] ss:$28 sps:$4 sm:$0xff]   ;;  %v5533_v21 = vld [vmem:[%s7488_s8 + $0x48] ss:$28 sps:$4 sm:$0xff]  }
 0x3c9   :  { %v7026_v27 = vpop.f32.mrb[8].mxu1 }
 0x3ca   :  { %v2385_v28 = vpop.f32.mrb[9].mxu1  ;;  %v2384_v7 = vadd.f32 %v7026_v27, %v2139_v3  ;;  %v5546_v27 = vld [vmem:[%s7488_s8 + $0x280] ss:$28 sps:$4 sm:$0xff]  }
 0x3cb   :  { %v2386_v29 = vadd.f32 %v2385_v28, %v2143_v22  ;;  %v2387_v30 = vpop.f32.mrb[10].mxu1  ;;  %3897 = vmatpush1.bf16.msra.mxu1 %v5468_v23  ;;  %3979 = vmatpush1.bf16.msra.mxu0 %v5471_v24  ;;  %v5537_v22 = vld [vmem:[%s7488_s8 + $0x50] ss:$28 sps:$4 sm:$0xff]   ;;  %v5540_v23 = vld [vmem:[%s7488_s8 + $0x84] ss:$28 sps:$4 sm:$0xff]  }
 0x3cc   :  { %v2388_v33 = vpop.f32.mrb[11].mxu1  ;;  %3898 = vmatprep.subr.bf16.mxu1 %v5476_v25  ;;  %3980 = vmatprep.subr.bf16.mxu0 %v5479_v26  ;;  %v2392_v13 = vmax.f32 %v2384_v7, 0.0  ;;  %v5541_v24 = vld [vmem:[%s7488_s8 + $0x248] ss:$28 sps:$4 sm:$0xff]   ;;  %v5538_v25 = vld [vmem:[%s7488_s8 + $0x80] ss:$28 sps:$4 sm:$0xff]  }
 0x3cd   :  { %v2393_v36 = vmax.f32 %v2386_v29, 0.0  ;;  %v5545_v26 = vld [vmem:[%s7488_s8 + $0xbc] ss:$28 sps:$4 sm:$0xff]   ;;  %v5550_v30 = vld [vmem:[%s7488_s8 + $0xf4] ss:$28 sps:$4 sm:$0xff]  }
 0x3ce   :  { %v7146_v17 = vpack.c.bf16 %v2392_v13, %v2392_v13  ;;  %v5543_v28 = vld [vmem:[%s7488_s8 + $0xb8] ss:$28 sps:$4 sm:$0xff]   ;;  %v5547_v29 = vld [vmem:[%s7488_s8 + $0xc0] ss:$28 sps:$4 sm:$0xff]   ;;  %v5588_v7 = vld [vmem:[%s7488_s8 + $0x2b0] ss:$28 sps:$4 sm:$0xff]  }
 0x3cf   :  { %v7040_v37 = vpack.c.bf16 %v2393_v36, %v2393_v36  ;;  %3899 = vmatpush1.bf16.msra.mxu1 %v5474_v31  ;;  %3981 = vmatpush1.bf16.msra.mxu0 %v5477_v32  ;;  %v5551_v31 = vld [vmem:[%s7488_s8 + $0x2b8] ss:$28 sps:$4 sm:$0xff]   ;;  %v5548_v32 = vld [vmem:[%s7488_s8 + $0xf0] ss:$28 sps:$4 sm:$0xff]   ;;  %v5553_v36 = vld [vmem:[%s7488_s8 + $0x128] ss:$28 sps:$4 sm:$0xff]  }
 0x3d0   :  { %3900 = vmatprep.subr.bf16.mxu1 %v5482_v34  ;;  %3982 = vmatprep.subr.bf16.mxu0 %v5485_v35  ;;  %v5552_v33 = vld [vmem:[%s7488_s8 + $0xf8] ss:$28 sps:$4 sm:$0xff]   ;;  %v5555_v34 = vld [vmem:[%s7488_s8 + $0x12c] ss:$28 sps:$4 sm:$0xff]   ;;  %v5586_v3 = vld [vmem:[%s7488_s8 + $0x600] ss:$28 sps:$4 sm:$0xff]  }
 0x3d1   :  { %3916 = vmatprep.mubr.bf16.mxu1 %v7040_v37  ;;  %3998 = vmatprep.mubr.bf16.mxu0 %v7040_v37  ;;  %v5556_v35 = vld [vmem:[%s7488_s8 + $0x2f0] ss:$28 sps:$4 sm:$0xff]  }
 0x3d2   :  { %v5597_v13 = vld [vmem:[%s7488_s8 + $0x4b0] ss:$28 sps:$4 sm:$0xff]  }
 0x3d3   :  { %3901 = vmatpush1.bf16.msra.mxu1 %v5480_v38  ;;  %3983 = vmatpush1.bf16.msra.mxu0 %v5483_v39  ;;  %v5557_v38 = vld [vmem:[%s7488_s8 + $0x130] ss:$28 sps:$4 sm:$0xff]   ;;  %v5560_v39 = vld [vmem:[%s7488_s8 + $0x164] ss:$28 sps:$4 sm:$0xff]  }
 0x3d4   :  { %3902 = vmatprep.subr.bf16.mxu1 %v5488_v41  ;;  %3984 = vmatprep.subr.bf16.mxu0 %v5491_v42  ;;  %v5561_v41 = vld [vmem:[%s7488_s8 + $0x328] ss:$28 sps:$4 sm:$0xff]   ;;  %v5558_v42 = vld [vmem:[%s7488_s8 + $0x160] ss:$28 sps:$4 sm:$0xff]  }
 0x3d7   :  { %3903 = vmatpush1.bf16.msra.mxu1 %v5486_v43  ;;  %3985 = vmatpush1.bf16.msra.mxu0 %v5489_v44  ;;  %v5562_v43 = vld [vmem:[%s7488_s8 + $0x168] ss:$28 sps:$4 sm:$0xff]   ;;  %v5565_v44 = vld [vmem:[%s7488_s8 + $0x19c] ss:$28 sps:$4 sm:$0xff]  }
 0x3d8   :  { %3904 = vmatprep.subr.bf16.mxu1 %v5494_v46  ;;  %3986 = vmatprep.subr.bf16.mxu0 %v5497_v47  ;;  %v5566_v46 = vld [vmem:[%s7488_s8 + $0x360] ss:$28 sps:$4 sm:$0xff]   ;;  %v5563_v47 = vld [vmem:[%s7488_s8 + $0x198] ss:$28 sps:$4 sm:$0xff]  }
 0x3db   :  { %3905 = vmatpush1.bf16.msra.mxu1 %v5492_v48  ;;  %3987 = vmatpush1.bf16.msra.mxu0 %v5495_v49  ;;  %v5567_v48 = vld [vmem:[%s7488_s8 + $0x1a0] ss:$28 sps:$4 sm:$0xff]   ;;  %v5570_v49 = vld [vmem:[%s7488_s8 + $0x1d4] ss:$28 sps:$4 sm:$0xff]  }
 0x3dc   :  { %3906 = vmatprep.subr.bf16.mxu1 %v5500_v50  ;;  %3988 = vmatprep.subr.bf16.mxu0 %v5503_v51  ;;  %v5571_v50 = vld [vmem:[%s7488_s8 + $0x558] ss:$28 sps:$4 sm:$0xff]   ;;  %v5568_v51 = vld [vmem:[%s7488_s8 + $0x1d0] ss:$28 sps:$4 sm:$0xff]  }
 0x3df   :  { %3907 = vmatpush1.bf16.msra.mxu1 %v5498_v52  ;;  %3989 = vmatpush1.bf16.msra.mxu0 %v5501_v55  ;;  %v5572_v52 = vld [vmem:[%s7488_s8 + $0x398] ss:$28 sps:$4 sm:$0xff]   ;;  %v5575_v55 = vld [vmem:[%s7488_s8 + $0x20c] ss:$28 sps:$4 sm:$0xff]  }
 0x3e0   :  { %3908 = vmatprep.subr.bf16.mxu1 %v5506_v58  ;;  %3990 = vmatprep.subr.bf16.mxu0 %v5509_v59  ;;  %v5576_v58 = vld [vmem:[%s7488_s8 + $0x590] ss:$28 sps:$4 sm:$0xff]   ;;  %v5573_v59 = vld [vmem:[%s7488_s8 + $0x208] ss:$28 sps:$4 sm:$0xff]  }
 0x3e3   :  { %3909 = vmatpush1.bf16.msra.mxu1 %v5504_v15  ;;  %3991 = vmatpush1.bf16.msra.mxu0 %v5507_v61  ;;  %v5577_v15 = vld [vmem:[%s7488_s8 + $0x3d0] ss:$28 sps:$4 sm:$0xff]   ;;  %v5580_v61 = vld [vmem:[%s7488_s8 + $0x244] ss:$28 sps:$4 sm:$0xff]  }
 0x3e4   :  { %3910 = vmatprep.subr.bf16.mxu1 %v5512_v63  ;;  %3992 = vmatprep.subr.bf16.mxu0 %v5515_v0  ;;  %v5581_v63 = vld [vmem:[%s7488_s8 + $0x5c8] ss:$28 sps:$4 sm:$0xff]   ;;  %v5578_v0 = vld [vmem:[%s7488_s8 + $0x240] ss:$28 sps:$4 sm:$0xff]  }
 0x3e7   :  { %3911 = vmatpush1.bf16.msra.mxu1 %v5510_v1  ;;  %3993 = vmatpush1.bf16.msra.mxu0 %v5513_v2  ;;  %v5582_v1 = vld [vmem:[%s7488_s8 + $0x408] ss:$28 sps:$4 sm:$0xff]   ;;  %v5585_v2 = vld [vmem:[%s7488_s8 + $0x27c] ss:$28 sps:$4 sm:$0xff]  }
 0x3e8   :  { %3912 = vmatprep.subr.bf16.mxu1 %v5518_v4  ;;  %3994 = vmatprep.subr.bf16.mxu0 %v5521_v5  ;;  %v5583_v4 = vld [vmem:[%s7488_s8 + $0x278] ss:$28 sps:$4 sm:$0xff]   ;;  %v5587_v5 = vld [vmem:[%s7488_s8 + $0x440] ss:$28 sps:$4 sm:$0xff]  }
 0x3eb   :  { %3913 = vmatpush1.bf16.msra.mxu1 %v5516_v6  ;;  %3995 = vmatpush1.bf16.msra.mxu0 %v5519_v45  ;;  %v5590_v6 = vld [vmem:[%s7488_s8 + $0x2b4] ss:$28 sps:$4 sm:$0xff]  }
 0x3ec   :  { %3914 = vmatprep.subr.bf16.mxu1 %v5524_v8  ;;  %3996 = vmatprep.subr.bf16.mxu0 %v5527_v9  ;;  %v5591_v45 = vld [vmem:[%s7488_s8 + $0x638] ss:$28 sps:$4 sm:$0xff]   ;;  %v5595_v9 = vld [vmem:[%s7488_s8 + $0x2ec] ss:$28 sps:$4 sm:$0xff]  }
 0x3ed   :  { %v5592_v8 = vld [vmem:[%s7488_s8 + $0x478] ss:$28 sps:$4 sm:$0xff]  }
 0x3ef   :  { %3915 = vmatpush1.bf16.msra.mxu1 %v5522_v10  ;;  %3997 = vmatpush1.bf16.msra.mxu0 %v5525_v12  ;;  %v5596_v10 = vld [vmem:[%s7488_s8 + $0x670] ss:$28 sps:$4 sm:$0xff]   ;;  %v5593_v12 = vld [vmem:[%s7488_s8 + $0x2e8] ss:$28 sps:$4 sm:$0xff]  }
 0x3f0   :  { %4007 = vmatprep.subr.bf16.mxu1 %v5530_v14  ;;  %4792 = vmatprep.subr.bf16.mxu0 %v5531_v11  ;;  %v5600_v14 = vld [vmem:[%s7488_s8 + $0x324] ss:$28 sps:$4 sm:$0xff]  }
 0x3f1   :  { %v5601_v11 = vld [vmem:[%s7488_s8 + $0x6a8] ss:$28 sps:$4 sm:$0xff]  }
 0x3f2   :  { %3917 = vmatmul.mubr.bf16.vlgmr.msra.gmra.mrb[12].mxu1 %v7146_v17  ;;  %3999 = vmatmul.mubr.bf16.vlgmr.msra.gmra.mrb[8].mxu0 %v7146_v17 }
 0x3f3   :  { %4008 = vmatpush1.bf16.msra.mxu1 %v5528_v16  ;;  %4039 = vmatprep.mubr.bf16.mxu1 %v6932_v60  ;;  %v5598_v16 = vld [vmem:[%s7488_s8 + $0x320] ss:$28 sps:$4 sm:$0xff]  }
 0x3f4   :  { %4793 = vmatpush3.bf16.msra.mxu0 %v5532_v18  ;;  %4121 = vmatprep.mubr.bf16.mxu0 %v6932_v60  ;;  %v5542_v60 = vld [vmem:[%s7488_s8 + $0x88] ss:$28 sps:$4 sm:$0xff]  }
 0x3f5   :  { %4009 = vmatprep.subr.bf16.mxu1 %v5535_v19  ;;  %4794 = vmatprep.subr.bf16.mxu0 %v5536_v20  ;;  %v5602_v18 = vld [vmem:[%s7488_s8 + $0x4e8] ss:$28 sps:$4 sm:$0xff]   ;;  %v5605_v19 = vld [vmem:[%s7488_s8 + $0x35c] ss:$28 sps:$4 sm:$0xff]  }
 0x3f6   :  { %v5606_v20 = vld [vmem:[%s7488_s8 + $0x6e0] ss:$28 sps:$4 sm:$0xff]  }
 0x3f7   :  { %4010 = vmatpush1.bf16.msra.mxu1 %v5533_v21  ;;  %v5603_v21 = vld [vmem:[%s7488_s8 + $0x358] ss:$28 sps:$4 sm:$0xff]  }
 0x3f8   :  { %4795 = vmatpush3.bf16.msra.mxu0 %v5537_v22  ;;  %4011 = vmatprep.subr.bf16.mxu1 %v5540_v23  ;;  %v5607_v22 = vld [vmem:[%s7488_s8 + $0x520] ss:$28 sps:$4 sm:$0xff]   ;;  %v5610_v23 = vld [vmem:[%s7488_s8 + $0x394] ss:$28 sps:$4 sm:$0xff]  }
 0x3f9   :  { %4796 = vmatprep.subr.bf16.mxu0 %v5541_v24  ;;  %v5608_v24 = vld [vmem:[%s7488_s8 + $0x390] ss:$28 sps:$4 sm:$0xff]  }
 0x3fb   :  { %4012 = vmatpush1.bf16.msra.mxu1 %v5538_v25  ;;  %v5613_v25 = vld [vmem:[%s7488_s8 + $0x3cc] ss:$28 sps:$4 sm:$0xff]  }
 0x3fc   :  { %4797 = vmatpush3.bf16.msra.mxu0 %v5542_v60  ;;  %4013 = vmatprep.subr.bf16.mxu1 %v5545_v26  ;;  %v5611_v60 = vld [vmem:[%s7488_s8 + $0x3c8] ss:$28 sps:$4 sm:$0xff]  }
 0x3fd   :  { %4798 = vmatprep.subr.bf16.mxu0 %v5546_v27  ;;  %v5616_v26 = vld [vmem:[%s7488_s8 + $0x404] ss:$28 sps:$4 sm:$0xff]  }
 0x3fe   :  { %v5614_v27 = vld [vmem:[%s7488_s8 + $0x400] ss:$28 sps:$4 sm:$0xff]  }
 0x3ff   :  { %4014 = vmatpush1.bf16.msra.mxu1 %v5543_v28  ;;  %v5622_v28 = vld [vmem:[%s7488_s8 + $0x474] ss:$28 sps:$4 sm:$0xff]  }
 0x400   :  { %4799 = vmatpush3.bf16.msra.mxu0 %v5547_v29  ;;  %4015 = vmatprep.subr.bf16.mxu1 %v5550_v30  ;;  %v5620_v29 = vld [vmem:[%s7488_s8 + $0x470] ss:$28 sps:$4 sm:$0xff]  }
 0x401   :  { %4800 = vmatprep.subr.bf16.mxu0 %v5551_v31  ;;  %v5625_v30 = vld [vmem:[%s7488_s8 + $0x4ac] ss:$28 sps:$4 sm:$0xff]  }
 0x402   :  { %v5623_v31 = vld [vmem:[%s7488_s8 + $0x4a8] ss:$28 sps:$4 sm:$0xff]  }
 0x403   :  { %4016 = vmatpush1.bf16.msra.mxu1 %v5548_v32  ;;  %v5628_v32 = vld [vmem:[%s7488_s8 + $0x4e4] ss:$28 sps:$4 sm:$0xff]  }
 0x404   :  { %4801 = vmatpush3.bf16.msra.mxu0 %v5552_v33  ;;  %4017 = vmatprep.subr.bf16.mxu1 %v5555_v34  ;;  %v5626_v33 = vld [vmem:[%s7488_s8 + $0x4e0] ss:$28 sps:$4 sm:$0xff]  }
 0x405   :  { %4802 = vmatprep.subr.bf16.mxu0 %v5556_v35  ;;  %v5631_v34 = vld [vmem:[%s7488_s8 + $0x51c] ss:$28 sps:$4 sm:$0xff]  }
 0x406   :  { %v5629_v35 = vld [vmem:[%s7488_s8 + $0x518] ss:$28 sps:$4 sm:$0xff]  }
 0x407   :  { %4018 = vmatpush1.bf16.msra.mxu1 %v5553_v36  ;;  %v5634_v36 = vld [vmem:[%s7488_s8 + $0x554] ss:$28 sps:$4 sm:$0xff]  }
 0x408   :  { %4803 = vmatpush3.bf16.msra.mxu0 %v5557_v38  ;;  %4019 = vmatprep.subr.bf16.mxu1 %v5560_v39  ;;  %v5632_v38 = vld [vmem:[%s7488_s8 + $0x550] ss:$28 sps:$4 sm:$0xff]  }
 0x409   :  { %4804 = vmatprep.subr.bf16.mxu0 %v5561_v41  ;;  %v5637_v39 = vld [vmem:[%s7488_s8 + $0x58c] ss:$28 sps:$4 sm:$0xff]  }
 0x40a   :  { %v5635_v41 = vld [vmem:[%s7488_s8 + $0x588] ss:$28 sps:$4 sm:$0xff]  }
 0x40b   :  { %4020 = vmatpush1.bf16.msra.mxu1 %v5558_v42  ;;  %v5640_v42 = vld [vmem:[%s7488_s8 + $0x5c4] ss:$28 sps:$4 sm:$0xff]  }
 0x40c   :  { %4805 = vmatpush3.bf16.msra.mxu0 %v5562_v43  ;;  %4021 = vmatprep.subr.bf16.mxu1 %v5565_v44  ;;  %v5638_v43 = vld [vmem:[%s7488_s8 + $0x5c0] ss:$28 sps:$4 sm:$0xff]  }
 0x40d   :  { %4806 = vmatprep.subr.bf16.mxu0 %v5566_v46  ;;  %v5643_v44 = vld [vmem:[%s7488_s8 + $0x5fc] ss:$28 sps:$4 sm:$0xff]  }
 0x40e   :  { %v5641_v46 = vld [vmem:[%s7488_s8 + $0x5f8] ss:$28 sps:$4 sm:$0xff]  }
 0x40f   :  { %4022 = vmatpush1.bf16.msra.mxu1 %v5563_v47  ;;  %v5646_v47 = vld [vmem:[%s7488_s8 + $0x634] ss:$28 sps:$4 sm:$0xff]  }
 0x410   :  { %4807 = vmatpush3.bf16.msra.mxu0 %v5567_v48  ;;  %4023 = vmatprep.subr.bf16.mxu1 %v5570_v49  ;;  %v5644_v48 = vld [vmem:[%s7488_s8 + $0x630] ss:$28 sps:$4 sm:$0xff]  }
 0x411   :  { %4814 = vmatprep.subr.bf16.mxu0 %v5571_v50  ;;  %v5649_v49 = vld [vmem:[%s7488_s8 + $0x66c] ss:$28 sps:$4 sm:$0xff]  }
 0x412   :  { %v5647_v50 = vld [vmem:[%s7488_s8 + $0x668] ss:$28 sps:$4 sm:$0xff]  }
 0x413   :  { %4122 = vmatmul.mubr.bf16.vlgmr.msra.gmra.mrb[12].mxu0 %v6940_v62  ;;  %4024 = vmatpush1.bf16.msra.mxu1 %v5568_v51  ;;  %v5652_v51 = vld [vmem:[%s7488_s8 + $0x6a4] ss:$28 sps:$4 sm:$0xff]  }
 0x414   :  { %4815 = vmatpush3.bf16.msra.mxu0 %v5572_v52  ;;  %4161 = vmatprep.mubr.bf16.mxu0 %v7040_v37  ;;  %v5650_v52 = vld [vmem:[%s7488_s8 + $0x6a0] ss:$28 sps:$4 sm:$0xff]  }
 0x415   :  { %4025 = vmatprep.subr.bf16.mxu1 %v5575_v55  ;;  %4816 = vmatprep.subr.bf16.mxu0 %v5576_v58  ;;  %v5655_v55 = vld [vmem:[%s7488_s8 + $0x6dc] ss:$28 sps:$4 sm:$0xff]  }
 0x416   :  { %v5653_v58 = vld [vmem:[%s7488_s8 + $0x6d8] ss:$28 sps:$4 sm:$0xff]  }
 0x417   :  { %4026 = vmatpush1.bf16.msra.mxu1 %v5573_v59  ;;  %v7440_v59 = vld [vmem:[%s7489_s9] sm:$0x7f] }
 0x418   :  { %4817 = vmatpush3.bf16.msra.mxu0 %v5577_v15  ;;  %4027 = vmatprep.subr.bf16.mxu1 %v5580_v61  ;;  %v2659_v15 = vrot.slane %v7440_v59, %v6512_v54  ;;  %v2667_v61 = vrot.slane %v7440_v59, %v6609_v40 }
 0x419   :  { %4818 = vmatprep.subr.bf16.mxu0 %v5581_v63  ;;  %v2663_v63 = vrot.slane %v7440_v59, %v6520_v56 }
 0x41b   :  { %4028 = vmatpush1.bf16.msra.mxu1 %v5578_v0  ;;  %v2671_v0 = vrot.slane %v7440_v59, %v6523_v57 }
 0x41c   :  { %4819 = vmatpush3.bf16.msra.mxu0 %v5582_v1  ;;  %4029 = vmatprep.subr.bf16.mxu1 %v5585_v2 }
 0x41d   :  { %4820 = vmatprep.subr.bf16.mxu0 %v5586_v3 }
 0x41f   :  { %4030 = vmatpush1.bf16.msra.mxu1 %v5583_v4 }
 0x420   :  { %4821 = vmatpush3.bf16.msra.mxu0 %v5587_v5  ;;  %4031 = vmatprep.subr.bf16.mxu1 %v5590_v6 }
 0x421   :  { %4822 = vmatprep.subr.bf16.mxu0 %v5591_v45 }
 0x423   :  { %4032 = vmatpush1.bf16.msra.mxu1 %v5588_v7 }
 0x424   :  { %4823 = vmatpush3.bf16.msra.mxu0 %v5592_v8  ;;  %4033 = vmatprep.subr.bf16.mxu1 %v5595_v9 }
 0x425   :  { %4824 = vmatprep.subr.bf16.mxu0 %v5596_v10 }
 0x427   :  { %4034 = vmatpush1.bf16.msra.mxu1 %v5593_v12 }
 0x428   :  { %4825 = vmatpush3.bf16.msra.mxu0 %v5597_v13  ;;  %4035 = vmatprep.subr.bf16.mxu1 %v5600_v14 }
 0x429   :  { %4826 = vmatprep.subr.bf16.mxu0 %v5601_v11 }
 0x42b   :  { %4036 = vmatpush1.bf16.msra.mxu1 %v5598_v16 }
 0x42c   :  { %4827 = vmatpush3.bf16.msra.mxu0 %v5602_v18  ;;  %4037 = vmatprep.subr.bf16.mxu1 %v5605_v19 }
 0x42d   :  { %4828 = vmatprep.subr.bf16.mxu0 %v5606_v20 }
 0x42f   :  { %4038 = vmatpush1.bf16.msra.mxu1 %v5603_v21 }
 0x430   :  { %4829 = vmatpush3.bf16.msra.mxu0 %v5607_v22  ;;  %4048 = vmatprep.subr.bf16.mxu1 %v5610_v23 }
 0x432   :  { %4040 = vmatmul.mubr.bf16.vlgmr.msra.gmra.mrb[16].mxu1 %v6940_v62  ;;  %v5619_v62 = vld [vmem:[%s7488_s8 + $0x43c] ss:$28 sps:$4 sm:$0xff]  }
 0x433   :  { %4162 = vmatmul.mubr.bf16.vlgmr.msra.gmra.mrb[16].mxu0 %v7146_v17  ;;  %4049 = vmatpush1.bf16.msra.mxu1 %v5608_v24 }
 0x434   :  { %4080 = vmatprep.mubr.bf16.mxu1 %v7040_v37  ;;  %4050 = vmatprep.subr.bf16.mxu1 %v5613_v25  ;;  %v5617_v37 = vld [vmem:[%s7488_s8 + $0x438] ss:$28 sps:$4 sm:$0xff]   ;;  %s5721_s8 = smov [#allocation4]  }
 0x435   :  { %s4247_s9 = sshll.u32 %s5721_s8, 4  ;;  %s4248_s9 = int_to_ptr.vmem [resolvable:$true] %s4247_s9 }
 0x436   :  { %s5672_s19 = scalar_lea.vmem %s4248_s9, 256  ;;  %p5677_p1 = scmp.lt.s32.totalorder %s4248_s9, %s4248_s9 }
 0x437   :  { %4051 = vmatpush1.bf16.msra.mxu1 %v5611_v60  ;;  %p5673_p0 = scmp.ne.s32.totalorder %s4248_s9, %s5672_s19  ;;  %p5678_p2 = scmp.lt.s32.totalorder %s5672_s19, %s5672_s19 }
 0x438   :  { %4052 = vmatprep.subr.bf16.mxu1 %v5616_v26 }
 0x439   :  { %p5679_p3 = por %p5678_p2, %p5677_p1 }
 0x43b   :  { %4053 = vmatpush1.bf16.msra.mxu1 %v5614_v27  ;;  %p5680_p4 = pnand %p5679_p3, %p5673_p0 }
 0x43c   :  { %4054 = vmatprep.subr.bf16.mxu1 %v5619_v62 }
 0x43f   :  { %4055 = vmatpush1.bf16.msra.mxu1 %v5617_v37 }
 0x440   :  { %4056 = vmatprep.subr.bf16.mxu1 %v5622_v28 }
 0x443   :  { %4057 = vmatpush1.bf16.msra.mxu1 %v5620_v29 }
 0x444   :  { %4058 = vmatprep.subr.bf16.mxu1 %v5625_v30 }
 0x447   :  { %4059 = vmatpush1.bf16.msra.mxu1 %v5623_v31 }
 0x448   :  { %4060 = vmatprep.subr.bf16.mxu1 %v5628_v32 }
 0x44b   :  { %4061 = vmatpush1.bf16.msra.mxu1 %v5626_v33 }
 0x44c   :  { %4062 = vmatprep.subr.bf16.mxu1 %v5631_v34 }
 0x44f   :  { %4063 = vmatpush1.bf16.msra.mxu1 %v5629_v35 }
 0x450   :  { %4064 = vmatprep.subr.bf16.mxu1 %v5634_v36 }
 0x453   :  { %4065 = vmatpush1.bf16.msra.mxu1 %v5632_v38 }
 0x454   :  { %4066 = vmatprep.subr.bf16.mxu1 %v5637_v39 }
 0x457   :  { %4067 = vmatpush1.bf16.msra.mxu1 %v5635_v41 }
 0x458   :  { %4068 = vmatprep.subr.bf16.mxu1 %v5640_v42 }
 0x45b   :  { %4069 = vmatpush1.bf16.msra.mxu1 %v5638_v43 }
 0x45c   :  { %4070 = vmatprep.subr.bf16.mxu1 %v5643_v44 }
 0x45f   :  { %4071 = vmatpush1.bf16.msra.mxu1 %v5641_v46 }
 0x460   :  { %4072 = vmatprep.subr.bf16.mxu1 %v5646_v47 }
 0x463   :  { %4073 = vmatpush1.bf16.msra.mxu1 %v5644_v48 }
 0x464   :  { %4074 = vmatprep.subr.bf16.mxu1 %v5649_v49 }
 0x467   :  { %4075 = vmatpush1.bf16.msra.mxu1 %v5647_v50 }
 0x468   :  { %4076 = vmatprep.subr.bf16.mxu1 %v5652_v51 }
 0x46b   :  { %4077 = vmatpush1.bf16.msra.mxu1 %v5650_v52 }
 0x46c   :  { %4078 = vmatprep.subr.bf16.mxu1 %v5655_v55 }
 0x46f   :  { %4079 = vmatpush1.bf16.msra.mxu1 %v5653_v58 }
 0x472   :  { %4081 = vmatmul.mubr.bf16.vlgmr.msra.gmra.mrb[16].mxu1 %v7146_v17 }
 0x4c5   :  { %v3918_v1 = vpop.f32.mrb[12].mxu1  ;;  %v4000_v2 = vpop.f32.mrb[8].mxu0 }
 0x4c6   :  { %v4842_v17 = vadd.f32 %v3918_v1, %v2659_v15  ;;  %v4844_v3 = vadd.f32 %v4000_v2, %v2667_v61  ;;  %v3920_v4 = vpop.f32.mrb[13].mxu1  ;;  %v4002_v5 = vpop.f32.mrb[9].mxu0 }
 0x4c7   :  { %v4843_v6 = vadd.f32 %v3920_v4, %v2663_v63  ;;  %v4845_v45 = vadd.f32 %v4002_v5, %v2671_v0  ;;  %v3922_v7 = vpop.f32.mrb[14].mxu1  ;;  %v4004_v8 = vpop.f32.mrb[10].mxu0 }
 0x4c8   :  { %v4169_v54 = vmul.f32 0.5, %v4842_v17  ;;  %v4171_v9 = vmul.f32 0.5, %v4844_v3  ;;  %v3923_v10 = vpop.f32.mrb[15].mxu1  ;;  %v4005_v40 = vpop.f32.mrb[11].mxu0 }
 0x4c9   :  { %v4170_v12 = vmul.f32 0.5, %v4843_v6  ;;  %v4172_v13 = vmul.f32 0.5, %v4845_v45 }
 0x4ca   :  { %5658 = vtanh.f32 %v4169_v54 }
 0x4cb   :  { %5660 = vtanh.f32 %v4171_v9 }
 0x4cc   :  { %5662 = vtanh.f32 %v4170_v12 }
 0x4cd   :  { %5664 = vtanh.f32 %v4172_v13 }
 0x4d4   :  { %v5659_v56 = vpop.eup %5658 }
 0x4d5   :  { %v5661_v57 = vpop.eup %5660  ;;  %v4183_v14 = vmul.f32 0.5, %v5659_v56 }
 0x4d6   :  { %v5663_v11 = vpop.eup %5662  ;;  %v4185_v16 = vmul.f32 0.5, %v5661_v57 }
 0x4d7   :  { %v5665_v18 = vpop.eup %5664  ;;  %v4190_v19 = vadd.f32 0.5, %v4183_v14  ;;  %v4184_v20 = vmul.f32 0.5, %v5663_v11 }
 0x4d8   :  { %v4192_v21 = vadd.f32 0.5, %v4185_v16  ;;  %v4186_v22 = vmul.f32 0.5, %v5665_v18 }
 0x4d9   :  { %v4191_v23 = vadd.f32 0.5, %v4184_v20 }
 0x4da   :  { %v4193_v24 = vadd.f32 0.5, %v4186_v22 }
 0x4db   :  { %v4788_v25 = vpack.c.bf16 %v4191_v23, %v4190_v19 }
 0x4dc   :  { %v4789_v60 = vpack.c.bf16 %v4193_v24, %v4192_v21 }
 0x4dd   :  { %4226 = vst [vmem:[#allocation2] sm:$0xff] %v4788_v25 }
 0x4de   :  { %4227 = vst [vmem:[#allocation2 + $0x8] sm:$0xff] %v4789_v60 }
 0x4df   :  { %5683 = shalt.err (!%p5680_p4)
}
 0x4e0   :  { %s5684_s21 = scalar_lea.hbm %s7491_s11, 256 }
 0x4e1   :  { %p5685_p5 = scmp.ne.s32.totalorder %s7491_s11, %s5684_s21  ;;  %p5688_p6 = scmp.lt.u32.totalorder %s5684_s21, %s7491_s11 }
 0x4e3   :  { %p5690_p7 = pnand %p5688_p6, %p5685_p5 }
 0x4e5   :  { %5693 = shalt.err (!%p5690_p7)
}
 0x4e6   :  { %4250 = dma.vmem_to_hbm [thread:$0]  %s4248_s9, 256, %s7491_s11, [#allocation5]   ;;  %v4808_v26 = vpop.f32.mrb[12].mxu0  ;;  %v2682_v29 = vsub.s32 6, %v6509_v53  ;;  %vm4229_vm1 = vcmask 125952   ;;  %v2674_v46 = vsub.s32 4, %v6509_v53 }
 0x4e7   :  { %v4809_v27 = vpop.f32.mrb[13].mxu0  ;;  %v2678_v47 = vsub.s32 5, %v6509_v53  ;;  %s5722_s11 = smov [#allocation2]  }
 0x4e8   :  { %v4810_v62 = vadd.f32 %v4809_v27, %v4808_v26  ;;  %v4811_v37 = vpop.f32.mrb[14].mxu0  ;;  %v2683_v30 = vrot.slane %v7440_v59, %v2682_v29  ;;  %v2675_v48 = vrot.slane %v7440_v59, %v2674_v46  ;;  %s4237_s26 = sshll.u32 %s5722_s11, 4  ;;  %s4238_s26 = int_to_ptr.vmem [resolvable:$true] %s4237_s26 }
 0x4e9   :  { %v4812_v28 = vpop.f32.mrb[15].mxu0  ;;  %v2679_v49 = vrot.slane %v7440_v59, %v2678_v47  ;;  %s5694_s0 = scalar_lea.vmem %s4238_s26, 448  ;;  %p5699_p9 = scmp.lt.s32.totalorder %s4238_s26, %s4238_s26 }
 0x4ea   :  { %v4124_v33 = vadd.f32 %v4810_v62, %v2683_v30  ;;  %p5695_p8 = scmp.ne.s32.totalorder %s4238_s26, %s5694_s0  ;;  %p5700_p10 = scmp.lt.s32.totalorder %s5694_s0, %s5694_s0 }
 0x4ec   :  { %p5701_p11 = por %p5700_p10, %p5699_p9 }
 0x4ee   :  { %p5702_p12 = pnand %p5701_p11, %p5695_p8 }
 0x506   :  { %v4830_v31 = vpop.f32.mrb[16].mxu0 }
 0x507   :  { %v4831_v32 = vpop.f32.mrb[17].mxu0 }
 0x508   :  { %v4832_v34 = vadd.f32 %v4831_v32, %v4830_v31  ;;  %v4833_v35 = vpop.f32.mrb[18].mxu0 }
 0x509   :  { %v4834_v36 = vpop.f32.mrb[19].mxu0 }
 0x50a   :  { %v4164_v38 = vadd.f32 %v4832_v34, %v4124_v33 }
 0x50c   :  { %v4175_v39 = vmul.f32 0.5, %v4164_v38 }
 0x50e   :  { %5666 = vtanh.f32 %v4175_v39 }
 0x518   :  { %v5667_v41 = vpop.eup %5666 }
 0x519   :  { %v4189_v42 = vmul.f32 0.5, %v5667_v41 }
 0x51b   :  { %v4196_v43 = vadd.f32 0.5, %v4189_v42 }
 0x51d   :  { %v4791_v44 = vpack.c.bf16 %v4196_v43, %v4196_v43 }
 0x51f   :  { %4230 = vst.msk [vmem:[#allocation2 + $0x18] sm:$0xf] %vm4229_vm1, %v4791_v44 }
 0x545   :  { %v4082_v50 = vpop.f32.mrb[16].mxu1 }
 0x546   :  { %v4846_v51 = vadd.f32 %v4082_v50, %v2675_v48  ;;  %v4084_v52 = vpop.f32.mrb[17].mxu1 }
 0x547   :  { %v4847_v55 = vadd.f32 %v4084_v52, %v2679_v49  ;;  %v4086_v58 = vpop.f32.mrb[18].mxu1 }
 0x548   :  { %v4173_v15 = vmul.f32 0.5, %v4846_v51  ;;  %v4087_v61 = vpop.f32.mrb[19].mxu1 }
 0x549   :  { %v4174_v63 = vmul.f32 0.5, %v4847_v55 }
 0x54a   :  { %5668 = vtanh.f32 %v4173_v15 }
 0x54b   :  { %5670 = vtanh.f32 %v4174_v63 }
 0x554   :  { %v5669_v0 = vpop.eup %5668 }
 0x555   :  { %v5671_v1 = vpop.eup %5670  ;;  %v4187_v2 = vmul.f32 0.5, %v5669_v0 }
 0x556   :  { %v4188_v17 = vmul.f32 0.5, %v5671_v1 }
 0x557   :  { %v4194_v3 = vadd.f32 0.5, %v4187_v2 }
 0x558   :  { %v4195_v53 = vadd.f32 0.5, %v4188_v17 }
 0x55a   :  { %v4790_v4 = vpack.c.bf16 %v4195_v53, %v4194_v3 }
 0x55c   :  { %4228 = vst [vmem:[#allocation2 + $0x10] sm:$0xff] %v4790_v4 }
 0x55d   :  { %5705 = shalt.err (!%p5702_p12)
}
 0x55e   :  { %s5706_s3 = scalar_lea.hbm %s7490_s10, 448 }
 0x55f   :  { %p5707_p13 = scmp.ne.s32.totalorder %s7490_s10, %s5706_s3  ;;  %p5710_p0 = scmp.lt.u32.totalorder %s5706_s3, %s7490_s10 }
 0x561   :  { %p5712_p1 = pnand %p5710_p0, %p5707_p13 }
 0x563   :  { %5715 = shalt.err (!%p5712_p1)
}
 0x564   :  { %4240 = dma.vmem_to_hbm [thread:$0]  %s4238_s26, 448, %s7490_s10, [#allocation3]  }
 0x565   :  { %5716 = dma.done.wait [#allocation3], 448  }
 0x566   :  { %5717 = vsyncadd [#allocation3], 4294966848 }
 0x567   :  { %5718 = dma.done.wait [#allocation5], 256  }
 0x568   :  { %5719 = vsyncadd [#allocation5], 4294967040 }
 0x569   :  { %4257 = vsyncpa [#allocation3], 1 }
 0x56a   :  { %4258 = vsyncpa [#allocation5], 1 }

</bundles_post_ra>
